<compile_context>
chip_gen: v6e
topology: v6e:2x2x1
jax: 0.10.0
libtpu: 0.0.40
codegen_flags: <defaults>
</compile_context>

<pallas_src>
import jax
import jax.numpy as jnp
from jax import lax
from jax.experimental import pallas as pl
from jax.experimental.pallas import tpu as pltpu

LN_EPS = 1e-5


def _predictor_kernel(x_ref, lstm_w_ref, head_w_ref, bias_ref, out_ref):
    """Single-program kernel: 3-layer LSTM -> LayerNorm -> SiLU MLP head.

    x_ref      : (T*BP, D)   bf16, time-major (row = t*BP + b), batch zero-padded to BP
    lstm_w_ref : (D+5H, 4H)  bf16, per layer [W_ih ; W_hh]; i/f/o columns pre-scaled by 0.5
    head_w_ref : (H+8H, 4H)  bf16, [w1 (H,4H) ; w2 (4H,4H) ; w3 (4H,4H)], zero padded
    bias_ref   : (8, 4H)     f32, rows = [b0, b1, b2, ln_g, ln_b, hb1, hb2, hb3]
    out_ref    : (BP, 4H)    f32, prediction in rows [:B], lanes [:36]
    """
    TB, D = x_ref.shape
    BP = out_ref.shape[0]
    T = TB // BP
    H4 = bias_ref.shape[1]
    H = H4 // 4

    bias = bias_ref[...]                                      # (8, 4H) f32, one vreg

    def lstm_layer(inp_bf, off, in_dim, b_row):
        # inp_bf: (T*BP, in_dim) bf16 value (registers).
        w_ih = lstm_w_ref[off:off + in_dim, :]                # (in_dim, 4H) bf16
        w_hh = lstm_w_ref[off + in_dim:off + in_dim + H, :]   # (H, 4H) bf16
        b = bias[b_row:b_row + 1, :]                          # (1, 4H) f32
        # Input projection for ALL timesteps in one MXU matmul; bias folded in here,
        # so only the tiny recurrent matmul remains on the serial per-step path.
        gates = jnp.dot(inp_bf, w_ih, preferred_element_type=jnp.float32) + b
        h = jnp.zeros((BP, H), jnp.float32)
        c = jnp.zeros((BP, H), jnp.float32)
        hs = []
        for t in range(T):                                    # static unroll (T=8)
            g = gates[t * BP:(t + 1) * BP, :] + jnp.dot(
                h.astype(jnp.bfloat16), w_hh, preferred_element_type=jnp.float32)
            # Single EUP pass: i/f/o columns hold pre/2 (scaled on host), so
            # 0.5*tanh(.)+0.5 == sigmoid(pre); the g column is unscaled -> plain tanh.
            tg = jnp.tanh(g)
            i_g = 0.5 * tg[:, 0 * H:1 * H] + 0.5
            f_g = 0.5 * tg[:, 1 * H:2 * H] + 0.5
            g_g = tg[:, 2 * H:3 * H]
            o_g = 0.5 * tg[:, 3 * H:4 * H] + 0.5
            c = f_g * c + i_g * g_g
            h = o_g * jnp.tanh(c)
            hs.append(h)                                      # f32, stays in registers
        return jnp.concatenate(hs, axis=0), h                 # (T*BP, H) f32, (BP, H) f32

    # Layer-major: each layer's hidden sequence is held in registers and feeds the
    # next layer's batched input projection (no VMEM round trip).
    hs0, _ = lstm_layer(x_ref[...], 0, D, 0)
    hs1, _ = lstm_layer(hs0.astype(jnp.bfloat16), D + H, H, 1)
    _, h_fin = lstm_layer(hs1.astype(jnp.bfloat16), D + 3 * H, H, 2)

    # LayerNorm on the last-timestep hidden state (LN is per-timestep, so this equals
    # normalizing the whole encoded sequence and then taking [:, -1]).
    mean = jnp.mean(h_fin, axis=-1, keepdims=True)
    var = jnp.mean((h_fin - mean) ** 2, axis=-1, keepdims=True)
    normed = (h_fin - mean) * lax.rsqrt(var + LN_EPS)
    normed = normed * bias[3:4, :H] + bias[4:5, :H]

    def silu(z):
        # SiLU with a tanh-based sigmoid (single native EUP op on v5e/v6e/v7x).
        return z * (0.5 * jnp.tanh(0.5 * z) + 0.5)

    w1 = head_w_ref[0:H, :]                                   # (H, 4H) bf16
    w2 = head_w_ref[H:H + H4, :]                              # (4H, 4H) bf16
    w3 = head_w_ref[H + H4:H + 2 * H4, :]                     # (4H, 4H) bf16
    z1 = silu(jnp.dot(normed.astype(jnp.bfloat16), w1,
                      preferred_element_type=jnp.float32) + bias[5:6, :])
    z2 = silu(jnp.dot(z1.astype(jnp.bfloat16), w2,
                      preferred_element_type=jnp.float32) + bias[6:7, :])
    out_ref[...] = jnp.dot(z2.astype(jnp.bfloat16), w3,
                           preferred_element_type=jnp.float32) + bias[7:8, :]


def init_params(key, input_size, hidden_size):
    """Deterministic synthetic parameters (PyTorch-style uniform(-k, k), k=1/sqrt(H)).

    Weights are stored pre-transposed to (in, out); LSTM bias is b_ih + b_hh.
    """
    H = hidden_size
    k = 1.0 / jnp.sqrt(jnp.asarray(H, jnp.float32))

    def u(key, shape):
        return jax.random.uniform(key, shape, jnp.float32, minval=-k, maxval=k)

    keys = jax.random.split(key, 32)
    ki = iter(keys)
    params = {}
    in_sizes = [input_size, H, H]
    for l in range(3):
        params[f"wih{l}"] = u(next(ki), (in_sizes[l], 4 * H))
        params[f"whh{l}"] = u(next(ki), (H, 4 * H))
        params[f"b{l}"] = u(next(ki), (1, 4 * H)) + u(next(ki), (1, 4 * H))
    params["ln_g"] = jnp.ones((1, H), jnp.float32)
    params["ln_b"] = jnp.zeros((1, H), jnp.float32)
    params["w1"] = u(next(ki), (H, H))
    params["hb1"] = u(next(ki), (1, H))
    params["w2"] = u(next(ki), (H, H // 2))
    params["hb2"] = u(next(ki), (1, H // 2))
    params["w3"] = u(next(ki), (H // 2, 3 * 12))
    params["hb3"] = u(next(ki), (1, 3 * 12))
    return params


def pack_params(params, input_size, hidden_size):
    """Pack the 17 parameter arrays into 3 kernel slabs (bf16 weights, f32 biases)."""
    H = hidden_size
    H4 = 4 * H
    # Scale the i/f/o gate columns by 0.5 so sigmoid(pre) = 0.5*tanh(0.5*pre) + 0.5;
    # the g-gate columns stay unscaled (plain tanh).  0.5x is exact in bf16.
    gate_scale = jnp.concatenate([
        jnp.full((2 * H,), 0.5, jnp.float32),   # i, f
        jnp.ones((H,), jnp.float32),            # g
        jnp.full((H,), 0.5, jnp.float32),       # o
    ])[None, :]

    lstm_blocks = []
    for l in range(3):
        lstm_blocks.append(params[f"wih{l}"] * gate_scale)
        lstm_blocks.append(params[f"whh{l}"] * gate_scale)
    lstm_w = jnp.concatenate(lstm_blocks, axis=0).astype(jnp.bfloat16)   # (D+5H, 4H)

    def pad_cols(a, width=H4):
        return jnp.pad(a, ((0, 0), (0, width - a.shape[1])))

    def pad_rows(a, rows):
        return jnp.pad(a, ((0, rows - a.shape[0]), (0, 0)))

    w1p = pad_cols(params["w1"])                          # (H, 4H)
    w2p = pad_rows(pad_cols(params["w2"]), H4)            # (4H, 4H)
    w3p = pad_rows(pad_cols(params["w3"]), H4)            # (4H, 4H)
    head_w = jnp.concatenate([w1p, w2p, w3p], axis=0).astype(jnp.bfloat16)

    bias_rows = [
        params["b0"] * gate_scale, params["b1"] * gate_scale, params["b2"] * gate_scale,
        pad_cols(params["ln_g"]), pad_cols(params["ln_b"]),
        pad_cols(params["hb1"]), pad_cols(params["hb2"]), pad_cols(params["hb3"]),
    ]
    bias_pack = jnp.concatenate(bias_rows, axis=0).astype(jnp.float32)   # (8, 4H)
    return {"lstm_w": lstm_w, "head_w": head_w, "bias": bias_pack}


@jax.jit
def detailed_bitcoin_predictor(x_btd, packed):
    """x_btd: (B, T, D_in) float32 -> (B, 12, 3) float32."""
    B, T, D = x_btd.shape
    BP = ((B + 7) // 8) * 8                       # sublane-align the batch
    x_t = jnp.transpose(x_btd, (1, 0, 2))         # time-major
    x_t = jnp.pad(x_t, ((0, 0), (0, BP - B), (0, 0)))
    x_flat = x_t.reshape(T * BP, D).astype(jnp.bfloat16)

    vmem = pl.BlockSpec(memory_space=pltpu.MemorySpace.VMEM)
    out_pad = pl.pallas_call(
        _predictor_kernel,
        out_shape=jax.ShapeDtypeStruct((BP, packed["bias"].shape[1]), jnp.float32),
        in_specs=[vmem, vmem, vmem, vmem],
        out_specs=vmem,
    )(x_flat, packed["lstm_w"], packed["head_w"], packed["bias"])
    # Drop padded batch rows and padded output lanes.
    return out_pad[:B, :3 * 12].reshape(B, 12, 3)


def reference_forward(x_btd, params, matmul_dtype=None):
    """Plain-JAX reference (standard gate layout, standard sigmoid/tanh).

    matmul_dtype=None       -> full f32 / HIGHEST-precision matmuls.
    matmul_dtype=bfloat16   -> matmul operands rounded to bf16 with f32 accumulation,
                               mirroring the kernel's MXU precision exactly.
    """
    B, T, _ = x_btd.shape
    H = params["whh0"].shape[0]

    if matmul_dtype is None:
        def mdot(a, b):
            return jnp.dot(a, b, precision=lax.Precision.HIGHEST)
    else:
        def mdot(a, b):
            return jnp.dot(a.astype(matmul_dtype), b.astype(matmul_dtype),
                           preferred_element_type=jnp.float32)

    def lstm_layer(seq, wih, whh, b):
        h = jnp.zeros((B, H), jnp.float32)
        c = jnp.zeros((B, H), jnp.float32)
        outs = []
        for t in range(T):
            g = mdot(seq[:, t, :], wih) + mdot(h, whh) + b
            i_g = jax.nn.sigmoid(g[:, 0 * H:1 * H])
            f_g = jax.nn.sigmoid(g[:, 1 * H:2 * H])
            g_g = jnp.tanh(g[:, 2 * H:3 * H])
            o_g = jax.nn.sigmoid(g[:, 3 * H:4 * H])
            c = f_g * c + i_g * g_g
            h = o_g * jnp.tanh(c)
            outs.append(h)
        return jnp.stack(outs, axis=1), h

    seq = x_btd.astype(jnp.float32)
    h_last = None
    for l in range(3):
        seq, h_last = lstm_layer(seq, params[f"wih{l}"], params[f"whh{l}"], params[f"b{l}"])

    mean = jnp.mean(h_last, axis=-1, keepdims=True)
    var = jnp.mean((h_last - mean) ** 2, axis=-1, keepdims=True)
    normed = (h_last - mean) * lax.rsqrt(var + LN_EPS)
    normed = normed * params["ln_g"] + params["ln_b"]

    def silu(z):
        return z * jax.nn.sigmoid(z)

    z1 = silu(mdot(normed, params["w1"]) + params["hb1"])
    z2 = silu(mdot(z1, params["w2"]) + params["hb2"])
    z3 = mdot(z2, params["w3"]) + params["hb3"]
    return z3.reshape(B, 12, 3)


if __name__ == "__main__":
    # Small shapes consistent with the module: batch=2, seq=8, input_size=16, hidden=32.
    B, T, D_IN, HIDDEN = 2, 8, 16, 32

    key = jax.random.PRNGKey(0)
    k_params, k_x = jax.random.split(key)
    params = init_params(k_params, D_IN, HIDDEN)
    packed = pack_params(params, D_IN, HIDDEN)
    x = jax.random.normal(k_x, (B, T, D_IN), jnp.float32)

    out = detailed_bitcoin_predictor(x, packed)
    out = jax.block_until_ready(out)

    assert out.shape == (B, 12, 3), out.shape
    assert bool(jnp.all(jnp.isfinite(out)))

    # Semantic check: independent plain-JAX reference with matched bf16 matmul rounding.
    ref_bf16 = reference_forward(x, params, matmul_dtype=jnp.bfloat16)
    err_bf16 = float(jnp.max(jnp.abs(out - ref_bf16)))
    assert err_bf16 < 1e-2, f"max abs err vs bf16-matched reference: {err_bf16}"

    # Sanity check against the full-f32 reference (bounds bf16 precision loss).
    ref_f32 = reference_forward(x, params, matmul_dtype=None)
    err_f32 = float(jnp.max(jnp.abs(out - ref_f32)))
    assert err_f32 < 0.5, f"max abs err vs f32 reference: {err_f32}"

    print("KERNEL_OK")
</pallas_src>

<mosaic_0001>
module attributes {stable_mosaic.version = 11 : i64} {
  func.func @_predictor_kernel(%arg0: memref<64x16xbf16, #tpu.memory_space<vmem>>, %arg1: memref<176x128xbf16, #tpu.memory_space<vmem>>, %arg2: memref<288x128xbf16, #tpu.memory_space<vmem>>, %arg3: memref<8x128xf32, #tpu.memory_space<vmem>>, %arg4: memref<8x128xf32, #tpu.memory_space<vmem>>) attributes {dimension_semantics = [], scalar_prefetch = 0 : i64, scratch_operands = 0 : i64, tpu.core_type = #tpu.core_type<tc>} {
    %c0 = arith.constant 0 : index
    %c0_0 = arith.constant 0 : index
    %0 = vector.load %arg3[%c0, %c0_0] : memref<8x128xf32, #tpu.memory_space<vmem>>, vector<8x128xf32>
    %c0_1 = arith.constant 0 : index
    %c0_2 = arith.constant 0 : index
    %1 = vector.load %arg0[%c0_1, %c0_2] : memref<64x16xbf16, #tpu.memory_space<vmem>>, vector<64x16xbf16>
    %c0_3 = arith.constant 0 : index
    %c0_4 = arith.constant 0 : index
    %2 = vector.load %arg1[%c0_3, %c0_4] : memref<176x128xbf16, #tpu.memory_space<vmem>>, vector<16x128xbf16>
    %c16 = arith.constant 16 : index
    %c0_5 = arith.constant 0 : index
    %3 = vector.load %arg1[%c16, %c0_5] : memref<176x128xbf16, #tpu.memory_space<vmem>>, vector<32x128xbf16>
    %4 = vector.extract_strided_slice %0 {offsets = [0, 0], sizes = [1, 128], strides = [1, 1]} : vector<8x128xf32> to vector<1x128xf32>
    %cst = arith.constant dense<0.000000e+00> : vector<64x128xf32>
    %5 = tpu.matmul %1, %2, %cst {dimension_numbers = #tpu.dot_dimension_numbers<[1], [0], [0], [1], [0, 0, 1, 1], [], []>} : vector<64x16xbf16>, vector<16x128xbf16>, vector<64x128xf32> -> vector<64x128xf32>
    %6 = vector.broadcast %4 : vector<1x128xf32> to vector<64x128xf32>
    %7 = arith.addf %5, %6 : vector<64x128xf32>
    %cst_6 = arith.constant 0.000000e+00 : f32
    %8 = vector.broadcast %cst_6 : f32 to vector<8x32xf32>
    %cst_7 = arith.constant 0.000000e+00 : f32
    %9 = vector.broadcast %cst_7 : f32 to vector<8x32xf32>
    %10 = vector.extract_strided_slice %7 {offsets = [0, 0], sizes = [8, 128], strides = [1, 1]} : vector<64x128xf32> to vector<8x128xf32>
    %11 = arith.truncf %8 : vector<8x32xf32> to vector<8x32xbf16>
    %cst_8 = arith.constant dense<0.000000e+00> : vector<8x128xf32>
    %12 = tpu.matmul %11, %3, %cst_8 {dimension_numbers = #tpu.dot_dimension_numbers<[1], [0], [0], [1], [0, 0, 1, 1], [], []>} : vector<8x32xbf16>, vector<32x128xbf16>, vector<8x128xf32> -> vector<8x128xf32>
    %13 = arith.addf %10, %12 : vector<8x128xf32>
    %14 = math.tanh %13 : vector<8x128xf32>
    %15 = vector.extract_strided_slice %14 {offsets = [0, 0], sizes = [8, 32], strides = [1, 1]} : vector<8x128xf32> to vector<8x32xf32>
    %cst_9 = arith.constant 5.000000e-01 : f32
    %16 = vector.broadcast %cst_9 : f32 to vector<8x32xf32>
    %17 = arith.mulf %16, %15 : vector<8x32xf32>
    %cst_10 = arith.constant 5.000000e-01 : f32
    %18 = vector.broadcast %cst_10 : f32 to vector<8x32xf32>
    %19 = arith.addf %17, %18 : vector<8x32xf32>
    %20 = vector.extract_strided_slice %14 {offsets = [0, 32], sizes = [8, 32], strides = [1, 1]} : vector<8x128xf32> to vector<8x32xf32>
    %cst_11 = arith.constant 5.000000e-01 : f32
    %21 = vector.broadcast %cst_11 : f32 to vector<8x32xf32>
    %22 = arith.mulf %21, %20 : vector<8x32xf32>
    %cst_12 = arith.constant 5.000000e-01 : f32
    %23 = vector.broadcast %cst_12 : f32 to vector<8x32xf32>
    %24 = arith.addf %22, %23 : vector<8x32xf32>
    %25 = vector.extract_strided_slice %14 {offsets = [0, 64], sizes = [8, 32], strides = [1, 1]} : vector<8x128xf32> to vector<8x32xf32>
    %26 = vector.extract_strided_slice %14 {offsets = [0, 96], sizes = [8, 32], strides = [1, 1]} : vector<8x128xf32> to vector<8x32xf32>
    %cst_13 = arith.constant 5.000000e-01 : f32
    %27 = vector.broadcast %cst_13 : f32 to vector<8x32xf32>
    %28 = arith.mulf %27, %26 : vector<8x32xf32>
    %cst_14 = arith.constant 5.000000e-01 : f32
    %29 = vector.broadcast %cst_14 : f32 to vector<8x32xf32>
    %30 = arith.addf %28, %29 : vector<8x32xf32>
    %31 = arith.mulf %24, %9 : vector<8x32xf32>
    %32 = arith.mulf %19, %25 : vector<8x32xf32>
    %33 = arith.addf %31, %32 : vector<8x32xf32>
    %34 = math.tanh %33 : vector<8x32xf32>
    %35 = arith.mulf %30, %34 : vector<8x32xf32>
    %36 = vector.extract_strided_slice %7 {offsets = [8, 0], sizes = [8, 128], strides = [1, 1]} : vector<64x128xf32> to vector<8x128xf32>
    %37 = arith.truncf %35 : vector<8x32xf32> to vector<8x32xbf16>
    %cst_15 = arith.constant dense<0.000000e+00> : vector<8x128xf32>
    %38 = tpu.matmul %37, %3, %cst_15 {dimension_numbers = #tpu.dot_dimension_numbers<[1], [0], [0], [1], [0, 0, 1, 1], [], []>} : vector<8x32xbf16>, vector<32x128xbf16>, vector<8x128xf32> -> vector<8x128xf32>
    %39 = arith.addf %36, %38 : vector<8x128xf32>
    %40 = math.tanh %39 : vector<8x128xf32>
    %41 = vector.extract_strided_slice %40 {offsets = [0, 0], sizes = [8, 32], strides = [1, 1]} : vector<8x128xf32> to vector<8x32xf32>
    %cst_16 = arith.constant 5.000000e-01 : f32
    %42 = vector.broadcast %cst_16 : f32 to vector<8x32xf32>
    %43 = arith.mulf %42, %41 : vector<8x32xf32>
    %cst_17 = arith.constant 5.000000e-01 : f32
    %44 = vector.broadcast %cst_17 : f32 to vector<8x32xf32>
    %45 = arith.addf %43, %44 : vector<8x32xf32>
    %46 = vector.extract_strided_slice %40 {offsets = [0, 32], sizes = [8, 32], strides = [1, 1]} : vector<8x128xf32> to vector<8x32xf32>
    %cst_18 = arith.constant 5.000000e-01 : f32
    %47 = vector.broadcast %cst_18 : f32 to vector<8x32xf32>
    %48 = arith.mulf %47, %46 : vector<8x32xf32>
    %cst_19 = arith.constant 5.000000e-01 : f32
    %49 = vector.broadcast %cst_19 : f32 to vector<8x32xf32>
    %50 = arith.addf %48, %49 : vector<8x32xf32>
    %51 = vector.extract_strided_slice %40 {offsets = [0, 64], sizes = [8, 32], strides = [1, 1]} : vector<8x128xf32> to vector<8x32xf32>
    %52 = vector.extract_strided_slice %40 {offsets = [0, 96], sizes = [8, 32], strides = [1, 1]} : vector<8x128xf32> to vector<8x32xf32>
    %cst_20 = arith.constant 5.000000e-01 : f32
    %53 = vector.broadcast %cst_20 : f32 to vector<8x32xf32>
    %54 = arith.mulf %53, %52 : vector<8x32xf32>
    %cst_21 = arith.constant 5.000000e-01 : f32
    %55 = vector.broadcast %cst_21 : f32 to vector<8x32xf32>
    %56 = arith.addf %54, %55 : vector<8x32xf32>
    %57 = arith.mulf %50, %33 : vector<8x32xf32>
    %58 = arith.mulf %45, %51 : vector<8x32xf32>
    %59 = arith.addf %57, %58 : vector<8x32xf32>
    %60 = math.tanh %59 : vector<8x32xf32>
    %61 = arith.mulf %56, %60 : vector<8x32xf32>
    %62 = vector.extract_strided_slice %7 {offsets = [16, 0], sizes = [8, 128], strides = [1, 1]} : vector<64x128xf32> to vector<8x128xf32>
    %63 = arith.truncf %61 : vector<8x32xf32> to vector<8x32xbf16>
    %cst_22 = arith.constant dense<0.000000e+00> : vector<8x128xf32>
    %64 = tpu.matmul %63, %3, %cst_22 {dimension_numbers = #tpu.dot_dimension_numbers<[1], [0], [0], [1], [0, 0, 1, 1], [], []>} : vector<8x32xbf16>, vector<32x128xbf16>, vector<8x128xf32> -> vector<8x128xf32>
    %65 = arith.addf %62, %64 : vector<8x128xf32>
    %66 = math.tanh %65 : vector<8x128xf32>
    %67 = vector.extract_strided_slice %66 {offsets = [0, 0], sizes = [8, 32], strides = [1, 1]} : vector<8x128xf32> to vector<8x32xf32>
    %cst_23 = arith.constant 5.000000e-01 : f32
    %68 = vector.broadcast %cst_23 : f32 to vector<8x32xf32>
    %69 = arith.mulf %68, %67 : vector<8x32xf32>
    %cst_24 = arith.constant 5.000000e-01 : f32
    %70 = vector.broadcast %cst_24 : f32 to vector<8x32xf32>
    %71 = arith.addf %69, %70 : vector<8x32xf32>
    %72 = vector.extract_strided_slice %66 {offsets = [0, 32], sizes = [8, 32], strides = [1, 1]} : vector<8x128xf32> to vector<8x32xf32>
    %cst_25 = arith.constant 5.000000e-01 : f32
    %73 = vector.broadcast %cst_25 : f32 to vector<8x32xf32>
    %74 = arith.mulf %73, %72 : vector<8x32xf32>
    %cst_26 = arith.constant 5.000000e-01 : f32
    %75 = vector.broadcast %cst_26 : f32 to vector<8x32xf32>
    %76 = arith.addf %74, %75 : vector<8x32xf32>
    %77 = vector.extract_strided_slice %66 {offsets = [0, 64], sizes = [8, 32], strides = [1, 1]} : vector<8x128xf32> to vector<8x32xf32>
    %78 = vector.extract_strided_slice %66 {offsets = [0, 96], sizes = [8, 32], strides = [1, 1]} : vector<8x128xf32> to vector<8x32xf32>
    %cst_27 = arith.constant 5.000000e-01 : f32
    %79 = vector.broadcast %cst_27 : f32 to vector<8x32xf32>
    %80 = arith.mulf %79, %78 : vector<8x32xf32>
    %cst_28 = arith.constant 5.000000e-01 : f32
    %81 = vector.broadcast %cst_28 : f32 to vector<8x32xf32>
    %82 = arith.addf %80, %81 : vector<8x32xf32>
    %83 = arith.mulf %76, %59 : vector<8x32xf32>
    %84 = arith.mulf %71, %77 : vector<8x32xf32>
    %85 = arith.addf %83, %84 : vector<8x32xf32>
    %86 = math.tanh %85 : vector<8x32xf32>
    %87 = arith.mulf %82, %86 : vector<8x32xf32>
    %88 = vector.extract_strided_slice %7 {offsets = [24, 0], sizes = [8, 128], strides = [1, 1]} : vector<64x128xf32> to vector<8x128xf32>
    %89 = arith.truncf %87 : vector<8x32xf32> to vector<8x32xbf16>
    %cst_29 = arith.constant dense<0.000000e+00> : vector<8x128xf32>
    %90 = tpu.matmul %89, %3, %cst_29 {dimension_numbers = #tpu.dot_dimension_numbers<[1], [0], [0], [1], [0, 0, 1, 1], [], []>} : vector<8x32xbf16>, vector<32x128xbf16>, vector<8x128xf32> -> vector<8x128xf32>
    %91 = arith.addf %88, %90 : vector<8x128xf32>
    %92 = math.tanh %91 : vector<8x128xf32>
    %93 = vector.extract_strided_slice %92 {offsets = [0, 0], sizes = [8, 32], strides = [1, 1]} : vector<8x128xf32> to vector<8x32xf32>
    %cst_30 = arith.constant 5.000000e-01 : f32
    %94 = vector.broadcast %cst_30 : f32 to vector<8x32xf32>
    %95 = arith.mulf %94, %93 : vector<8x32xf32>
    %cst_31 = arith.constant 5.000000e-01 : f32
    %96 = vector.broadcast %cst_31 : f32 to vector<8x32xf32>
    %97 = arith.addf %95, %96 : vector<8x32xf32>
    %98 = vector.extract_strided_slice %92 {offsets = [0, 32], sizes = [8, 32], strides = [1, 1]} : vector<8x128xf32> to vector<8x32xf32>
    %cst_32 = arith.constant 5.000000e-01 : f32
    %99 = vector.broadcast %cst_32 : f32 to vector<8x32xf32>
    %100 = arith.mulf %99, %98 : vector<8x32xf32>
    %cst_33 = arith.constant 5.000000e-01 : f32
    %101 = vector.broadcast %cst_33 : f32 to vector<8x32xf32>
    %102 = arith.addf %100, %101 : vector<8x32xf32>
    %103 = vector.extract_strided_slice %92 {offsets = [0, 64], sizes = [8, 32], strides = [1, 1]} : vector<8x128xf32> to vector<8x32xf32>
    %104 = vector.extract_strided_slice %92 {offsets = [0, 96], sizes = [8, 32], strides = [1, 1]} : vector<8x128xf32> to vector<8x32xf32>
    %cst_34 = arith.constant 5.000000e-01 : f32
    %105 = vector.broadcast %cst_34 : f32 to vector<8x32xf32>
    %106 = arith.mulf %105, %104 : vector<8x32xf32>
    %cst_35 = arith.constant 5.000000e-01 : f32
    %107 = vector.broadcast %cst_35 : f32 to vector<8x32xf32>
    %108 = arith.addf %106, %107 : vector<8x32xf32>
    %109 = arith.mulf %102, %85 : vector<8x32xf32>
    %110 = arith.mulf %97, %103 : vector<8x32xf32>
    %111 = arith.addf %109, %110 : vector<8x32xf32>
    %112 = math.tanh %111 : vector<8x32xf32>
    %113 = arith.mulf %108, %112 : vector<8x32xf32>
    %114 = vector.extract_strided_slice %7 {offsets = [32, 0], sizes = [8, 128], strides = [1, 1]} : vector<64x128xf32> to vector<8x128xf32>
    %115 = arith.truncf %113 : vector<8x32xf32> to vector<8x32xbf16>
    %cst_36 = arith.constant dense<0.000000e+00> : vector<8x128xf32>
    %116 = tpu.matmul %115, %3, %cst_36 {dimension_numbers = #tpu.dot_dimension_numbers<[1], [0], [0], [1], [0, 0, 1, 1], [], []>} : vector<8x32xbf16>, vector<32x128xbf16>, vector<8x128xf32> -> vector<8x128xf32>
    %117 = arith.addf %114, %116 : vector<8x128xf32>
    %118 = math.tanh %117 : vector<8x128xf32>
    %119 = vector.extract_strided_slice %118 {offsets = [0, 0], sizes = [8, 32], strides = [1, 1]} : vector<8x128xf32> to vector<8x32xf32>
    %cst_37 = arith.constant 5.000000e-01 : f32
    %120 = vector.broadcast %cst_37 : f32 to vector<8x32xf32>
    %121 = arith.mulf %120, %119 : vector<8x32xf32>
    %cst_38 = arith.constant 5.000000e-01 : f32
    %122 = vector.broadcast %cst_38 : f32 to vector<8x32xf32>
    %123 = arith.addf %121, %122 : vector<8x32xf32>
    %124 = vector.extract_strided_slice %118 {offsets = [0, 32], sizes = [8, 32], strides = [1, 1]} : vector<8x128xf32> to vector<8x32xf32>
    %cst_39 = arith.constant 5.000000e-01 : f32
    %125 = vector.broadcast %cst_39 : f32 to vector<8x32xf32>
    %126 = arith.mulf %125, %124 : vector<8x32xf32>
    %cst_40 = arith.constant 5.000000e-01 : f32
    %127 = vector.broadcast %cst_40 : f32 to vector<8x32xf32>
    %128 = arith.addf %126, %127 : vector<8x32xf32>
    %129 = vector.extract_strided_slice %118 {offsets = [0, 64], sizes = [8, 32], strides = [1, 1]} : vector<8x128xf32> to vector<8x32xf32>
    %130 = vector.extract_strided_slice %118 {offsets = [0, 96], sizes = [8, 32], strides = [1, 1]} : vector<8x128xf32> to vector<8x32xf32>
    %cst_41 = arith.constant 5.000000e-01 : f32
    %131 = vector.broadcast %cst_41 : f32 to vector<8x32xf32>
    %132 = arith.mulf %131, %130 : vector<8x32xf32>
    %cst_42 = arith.constant 5.000000e-01 : f32
    %133 = vector.broadcast %cst_42 : f32 to vector<8x32xf32>
    %134 = arith.addf %132, %133 : vector<8x32xf32>
    %135 = arith.mulf %128, %111 : vector<8x32xf32>
    %136 = arith.mulf %123, %129 : vector<8x32xf32>
    %137 = arith.addf %135, %136 : vector<8x32xf32>
    %138 = math.tanh %137 : vector<8x32xf32>
    %139 = arith.mulf %134, %138 : vector<8x32xf32>
    %140 = vector.extract_strided_slice %7 {offsets = [40, 0], sizes = [8, 128], strides = [1, 1]} : vector<64x128xf32> to vector<8x128xf32>
    %141 = arith.truncf %139 : vector<8x32xf32> to vector<8x32xbf16>
    %cst_43 = arith.constant dense<0.000000e+00> : vector<8x128xf32>
    %142 = tpu.matmul %141, %3, %cst_43 {dimension_numbers = #tpu.dot_dimension_numbers<[1], [0], [0], [1], [0, 0, 1, 1], [], []>} : vector<8x32xbf16>, vector<32x128xbf16>, vector<8x128xf32> -> vector<8x128xf32>
    %143 = arith.addf %140, %142 : vector<8x128xf32>
    %144 = math.tanh %143 : vector<8x128xf32>
    %145 = vector.extract_strided_slice %144 {offsets = [0, 0], sizes = [8, 32], strides = [1, 1]} : vector<8x128xf32> to vector<8x32xf32>
    %cst_44 = arith.constant 5.000000e-01 : f32
    %146 = vector.broadcast %cst_44 : f32 to vector<8x32xf32>
    %147 = arith.mulf %146, %145 : vector<8x32xf32>
    %cst_45 = arith.constant 5.000000e-01 : f32
    %148 = vector.broadcast %cst_45 : f32 to vector<8x32xf32>
    %149 = arith.addf %147, %148 : vector<8x32xf32>
    %150 = vector.extract_strided_slice %144 {offsets = [0, 32], sizes = [8, 32], strides = [1, 1]} : vector<8x128xf32> to vector<8x32xf32>
    %cst_46 = arith.constant 5.000000e-01 : f32
    %151 = vector.broadcast %cst_46 : f32 to vector<8x32xf32>
    %152 = arith.mulf %151, %150 : vector<8x32xf32>
    %cst_47 = arith.constant 5.000000e-01 : f32
    %153 = vector.broadcast %cst_47 : f32 to vector<8x32xf32>
    %154 = arith.addf %152, %153 : vector<8x32xf32>
    %155 = vector.extract_strided_slice %144 {offsets = [0, 64], sizes = [8, 32], strides = [1, 1]} : vector<8x128xf32> to vector<8x32xf32>
    %156 = vector.extract_strided_slice %144 {offsets = [0, 96], sizes = [8, 32], strides = [1, 1]} : vector<8x128xf32> to vector<8x32xf32>
    %cst_48 = arith.constant 5.000000e-01 : f32
    %157 = vector.broadcast %cst_48 : f32 to vector<8x32xf32>
    %158 = arith.mulf %157, %156 : vector<8x32xf32>
    %cst_49 = arith.constant 5.000000e-01 : f32
    %159 = vector.broadcast %cst_49 : f32 to vector<8x32xf32>
    %160 = arith.addf %158, %159 : vector<8x32xf32>
    %161 = arith.mulf %154, %137 : vector<8x32xf32>
    %162 = arith.mulf %149, %155 : vector<8x32xf32>
    %163 = arith.addf %161, %162 : vector<8x32xf32>
    %164 = math.tanh %163 : vector<8x32xf32>
    %165 = arith.mulf %160, %164 : vector<8x32xf32>
    %166 = vector.extract_strided_slice %7 {offsets = [48, 0], sizes = [8, 128], strides = [1, 1]} : vector<64x128xf32> to vector<8x128xf32>
    %167 = arith.truncf %165 : vector<8x32xf32> to vector<8x32xbf16>
    %cst_50 = arith.constant dense<0.000000e+00> : vector<8x128xf32>
    %168 = tpu.matmul %167, %3, %cst_50 {dimension_numbers = #tpu.dot_dimension_numbers<[1], [0], [0], [1], [0, 0, 1, 1], [], []>} : vector<8x32xbf16>, vector<32x128xbf16>, vector<8x128xf32> -> vector<8x128xf32>
    %169 = arith.addf %166, %168 : vector<8x128xf32>
    %170 = math.tanh %169 : vector<8x128xf32>
    %171 = vector.extract_strided_slice %170 {offsets = [0, 0], sizes = [8, 32], strides = [1, 1]} : vector<8x128xf32> to vector<8x32xf32>
    %cst_51 = arith.constant 5.000000e-01 : f32
    %172 = vector.broadcast %cst_51 : f32 to vector<8x32xf32>
    %173 = arith.mulf %172, %171 : vector<8x32xf32>
    %cst_52 = arith.constant 5.000000e-01 : f32
    %174 = vector.broadcast %cst_52 : f32 to vector<8x32xf32>
    %175 = arith.addf %173, %174 : vector<8x32xf32>
    %176 = vector.extract_strided_slice %170 {offsets = [0, 32], sizes = [8, 32], strides = [1, 1]} : vector<8x128xf32> to vector<8x32xf32>
    %cst_53 = arith.constant 5.000000e-01 : f32
    %177 = vector.broadcast %cst_53 : f32 to vector<8x32xf32>
    %178 = arith.mulf %177, %176 : vector<8x32xf32>
    %cst_54 = arith.constant 5.000000e-01 : f32
    %179 = vector.broadcast %cst_54 : f32 to vector<8x32xf32>
    %180 = arith.addf %178, %179 : vector<8x32xf32>
    %181 = vector.extract_strided_slice %170 {offsets = [0, 64], sizes = [8, 32], strides = [1, 1]} : vector<8x128xf32> to vector<8x32xf32>
    %182 = vector.extract_strided_slice %170 {offsets = [0, 96], sizes = [8, 32], strides = [1, 1]} : vector<8x128xf32> to vector<8x32xf32>
    %cst_55 = arith.constant 5.000000e-01 : f32
    %183 = vector.broadcast %cst_55 : f32 to vector<8x32xf32>
    %184 = arith.mulf %183, %182 : vector<8x32xf32>
    %cst_56 = arith.constant 5.000000e-01 : f32
    %185 = vector.broadcast %cst_56 : f32 to vector<8x32xf32>
    %186 = arith.addf %184, %185 : vector<8x32xf32>
    %187 = arith.mulf %180, %163 : vector<8x32xf32>
    %188 = arith.mulf %175, %181 : vector<8x32xf32>
    %189 = arith.addf %187, %188 : vector<8x32xf32>
    %190 = math.tanh %189 : vector<8x32xf32>
    %191 = arith.mulf %186, %190 : vector<8x32xf32>
    %192 = vector.extract_strided_slice %7 {offsets = [56, 0], sizes = [8, 128], strides = [1, 1]} : vector<64x128xf32> to vector<8x128xf32>
    %193 = arith.truncf %191 : vector<8x32xf32> to vector<8x32xbf16>
    %cst_57 = arith.constant dense<0.000000e+00> : vector<8x128xf32>
    %194 = tpu.matmul %193, %3, %cst_57 {dimension_numbers = #tpu.dot_dimension_numbers<[1], [0], [0], [1], [0, 0, 1, 1], [], []>} : vector<8x32xbf16>, vector<32x128xbf16>, vector<8x128xf32> -> vector<8x128xf32>
    %195 = arith.addf %192, %194 : vector<8x128xf32>
    %196 = math.tanh %195 : vector<8x128xf32>
    %197 = vector.extract_strided_slice %196 {offsets = [0, 0], sizes = [8, 32], strides = [1, 1]} : vector<8x128xf32> to vector<8x32xf32>
    %cst_58 = arith.constant 5.000000e-01 : f32
    %198 = vector.broadcast %cst_58 : f32 to vector<8x32xf32>
    %199 = arith.mulf %198, %197 : vector<8x32xf32>
    %cst_59 = arith.constant 5.000000e-01 : f32
    %200 = vector.broadcast %cst_59 : f32 to vector<8x32xf32>
    %201 = arith.addf %199, %200 : vector<8x32xf32>
    %202 = vector.extract_strided_slice %196 {offsets = [0, 32], sizes = [8, 32], strides = [1, 1]} : vector<8x128xf32> to vector<8x32xf32>
    %cst_60 = arith.constant 5.000000e-01 : f32
    %203 = vector.broadcast %cst_60 : f32 to vector<8x32xf32>
    %204 = arith.mulf %203, %202 : vector<8x32xf32>
    %cst_61 = arith.constant 5.000000e-01 : f32
    %205 = vector.broadcast %cst_61 : f32 to vector<8x32xf32>
    %206 = arith.addf %204, %205 : vector<8x32xf32>
    %207 = vector.extract_strided_slice %196 {offsets = [0, 64], sizes = [8, 32], strides = [1, 1]} : vector<8x128xf32> to vector<8x32xf32>
    %208 = vector.extract_strided_slice %196 {offsets = [0, 96], sizes = [8, 32], strides = [1, 1]} : vector<8x128xf32> to vector<8x32xf32>
    %cst_62 = arith.constant 5.000000e-01 : f32
    %209 = vector.broadcast %cst_62 : f32 to vector<8x32xf32>
    %210 = arith.mulf %209, %208 : vector<8x32xf32>
    %cst_63 = arith.constant 5.000000e-01 : f32
    %211 = vector.broadcast %cst_63 : f32 to vector<8x32xf32>
    %212 = arith.addf %210, %211 : vector<8x32xf32>
    %213 = arith.mulf %206, %189 : vector<8x32xf32>
    %214 = arith.mulf %201, %207 : vector<8x32xf32>
    %215 = arith.addf %213, %214 : vector<8x32xf32>
    %216 = math.tanh %215 : vector<8x32xf32>
    %217 = arith.mulf %212, %216 : vector<8x32xf32>
    %218 = tpu.concatenate %35, %61, %87, %113, %139, %165, %191, %217 in 0 : vector<8x32xf32>, vector<8x32xf32>, vector<8x32xf32>, vector<8x32xf32>, vector<8x32xf32>, vector<8x32xf32>, vector<8x32xf32>, vector<8x32xf32> -> vector<64x32xf32>
    %219 = arith.truncf %218 : vector<64x32xf32> to vector<64x32xbf16>
    %c48 = arith.constant 48 : index
    %c0_64 = arith.constant 0 : index
    %220 = vector.load %arg1[%c48, %c0_64] : memref<176x128xbf16, #tpu.memory_space<vmem>>, vector<32x128xbf16>
    %c80 = arith.constant 80 : index
    %c0_65 = arith.constant 0 : index
    %221 = vector.load %arg1[%c80, %c0_65] : memref<176x128xbf16, #tpu.memory_space<vmem>>, vector<32x128xbf16>
    %222 = vector.extract_strided_slice %0 {offsets = [1, 0], sizes = [1, 128], strides = [1, 1]} : vector<8x128xf32> to vector<1x128xf32>
    %cst_66 = arith.constant dense<0.000000e+00> : vector<64x128xf32>
    %223 = tpu.matmul %219, %220, %cst_66 {dimension_numbers = #tpu.dot_dimension_numbers<[1], [0], [0], [1], [0, 0, 1, 1], [], []>} : vector<64x32xbf16>, vector<32x128xbf16>, vector<64x128xf32> -> vector<64x128xf32>
    %224 = vector.broadcast %222 : vector<1x128xf32> to vector<64x128xf32>
    %225 = arith.addf %223, %224 : vector<64x128xf32>
    %cst_67 = arith.constant 0.000000e+00 : f32
    %226 = vector.broadcast %cst_67 : f32 to vector<8x32xf32>
    %cst_68 = arith.constant 0.000000e+00 : f32
    %227 = vector.broadcast %cst_68 : f32 to vector<8x32xf32>
    %228 = vector.extract_strided_slice %225 {offsets = [0, 0], sizes = [8, 128], strides = [1, 1]} : vector<64x128xf32> to vector<8x128xf32>
    %229 = arith.truncf %226 : vector<8x32xf32> to vector<8x32xbf16>
    %cst_69 = arith.constant dense<0.000000e+00> : vector<8x128xf32>
    %230 = tpu.matmul %229, %221, %cst_69 {dimension_numbers = #tpu.dot_dimension_numbers<[1], [0], [0], [1], [0, 0, 1, 1], [], []>} : vector<8x32xbf16>, vector<32x128xbf16>, vector<8x128xf32> -> vector<8x128xf32>
    %231 = arith.addf %228, %230 : vector<8x128xf32>
    %232 = math.tanh %231 : vector<8x128xf32>
    %233 = vector.extract_strided_slice %232 {offsets = [0, 0], sizes = [8, 32], strides = [1, 1]} : vector<8x128xf32> to vector<8x32xf32>
    %cst_70 = arith.constant 5.000000e-01 : f32
    %234 = vector.broadcast %cst_70 : f32 to vector<8x32xf32>
    %235 = arith.mulf %234, %233 : vector<8x32xf32>
    %cst_71 = arith.constant 5.000000e-01 : f32
    %236 = vector.broadcast %cst_71 : f32 to vector<8x32xf32>
    %237 = arith.addf %235, %236 : vector<8x32xf32>
    %238 = vector.extract_strided_slice %232 {offsets = [0, 32], sizes = [8, 32], strides = [1, 1]} : vector<8x128xf32> to vector<8x32xf32>
    %cst_72 = arith.constant 5.000000e-01 : f32
    %239 = vector.broadcast %cst_72 : f32 to vector<8x32xf32>
    %240 = arith.mulf %239, %238 : vector<8x32xf32>
    %cst_73 = arith.constant 5.000000e-01 : f32
    %241 = vector.broadcast %cst_73 : f32 to vector<8x32xf32>
    %242 = arith.addf %240, %241 : vector<8x32xf32>
    %243 = vector.extract_strided_slice %232 {offsets = [0, 64], sizes = [8, 32], strides = [1, 1]} : vector<8x128xf32> to vector<8x32xf32>
    %244 = vector.extract_strided_slice %232 {offsets = [0, 96], sizes = [8, 32], strides = [1, 1]} : vector<8x128xf32> to vector<8x32xf32>
    %cst_74 = arith.constant 5.000000e-01 : f32
    %245 = vector.broadcast %cst_74 : f32 to vector<8x32xf32>
    %246 = arith.mulf %245, %244 : vector<8x32xf32>
    %cst_75 = arith.constant 5.000000e-01 : f32
    %247 = vector.broadcast %cst_75 : f32 to vector<8x32xf32>
    %248 = arith.addf %246, %247 : vector<8x32xf32>
    %249 = arith.mulf %242, %227 : vector<8x32xf32>
    %250 = arith.mulf %237, %243 : vector<8x32xf32>
    %251 = arith.addf %249, %250 : vector<8x32xf32>
    %252 = math.tanh %251 : vector<8x32xf32>
    %253 = arith.mulf %248, %252 : vector<8x32xf32>
    %254 = vector.extract_strided_slice %225 {offsets = [8, 0], sizes = [8, 128], strides = [1, 1]} : vector<64x128xf32> to vector<8x128xf32>
    %255 = arith.truncf %253 : vector<8x32xf32> to vector<8x32xbf16>
    %cst_76 = arith.constant dense<0.000000e+00> : vector<8x128xf32>
    %256 = tpu.matmul %255, %221, %cst_76 {dimension_numbers = #tpu.dot_dimension_numbers<[1], [0], [0], [1], [0, 0, 1, 1], [], []>} : vector<8x32xbf16>, vector<32x128xbf16>, vector<8x128xf32> -> vector<8x128xf32>
    %257 = arith.addf %254, %256 : vector<8x128xf32>
    %258 = math.tanh %257 : vector<8x128xf32>
    %259 = vector.extract_strided_slice %258 {offsets = [0, 0], sizes = [8, 32], strides = [1, 1]} : vector<8x128xf32> to vector<8x32xf32>
    %cst_77 = arith.constant 5.000000e-01 : f32
    %260 = vector.broadcast %cst_77 : f32 to vector<8x32xf32>
    %261 = arith.mulf %260, %259 : vector<8x32xf32>
    %cst_78 = arith.constant 5.000000e-01 : f32
    %262 = vector.broadcast %cst_78 : f32 to vector<8x32xf32>
    %263 = arith.addf %261, %262 : vector<8x32xf32>
    %264 = vector.extract_strided_slice %258 {offsets = [0, 32], sizes = [8, 32], strides = [1, 1]} : vector<8x128xf32> to vector<8x32xf32>
    %cst_79 = arith.constant 5.000000e-01 : f32
    %265 = vector.broadcast %cst_79 : f32 to vector<8x32xf32>
    %266 = arith.mulf %265, %264 : vector<8x32xf32>
    %cst_80 = arith.constant 5.000000e-01 : f32
    %267 = vector.broadcast %cst_80 : f32 to vector<8x32xf32>
    %268 = arith.addf %266, %267 : vector<8x32xf32>
    %269 = vector.extract_strided_slice %258 {offsets = [0, 64], sizes = [8, 32], strides = [1, 1]} : vector<8x128xf32> to vector<8x32xf32>
    %270 = vector.extract_strided_slice %258 {offsets = [0, 96], sizes = [8, 32], strides = [1, 1]} : vector<8x128xf32> to vector<8x32xf32>
    %cst_81 = arith.constant 5.000000e-01 : f32
    %271 = vector.broadcast %cst_81 : f32 to vector<8x32xf32>
    %272 = arith.mulf %271, %270 : vector<8x32xf32>
    %cst_82 = arith.constant 5.000000e-01 : f32
    %273 = vector.broadcast %cst_82 : f32 to vector<8x32xf32>
    %274 = arith.addf %272, %273 : vector<8x32xf32>
    %275 = arith.mulf %268, %251 : vector<8x32xf32>
    %276 = arith.mulf %263, %269 : vector<8x32xf32>
    %277 = arith.addf %275, %276 : vector<8x32xf32>
    %278 = math.tanh %277 : vector<8x32xf32>
    %279 = arith.mulf %274, %278 : vector<8x32xf32>
    %280 = vector.extract_strided_slice %225 {offsets = [16, 0], sizes = [8, 128], strides = [1, 1]} : vector<64x128xf32> to vector<8x128xf32>
    %281 = arith.truncf %279 : vector<8x32xf32> to vector<8x32xbf16>
    %cst_83 = arith.constant dense<0.000000e+00> : vector<8x128xf32>
    %282 = tpu.matmul %281, %221, %cst_83 {dimension_numbers = #tpu.dot_dimension_numbers<[1], [0], [0], [1], [0, 0, 1, 1], [], []>} : vector<8x32xbf16>, vector<32x128xbf16>, vector<8x128xf32> -> vector<8x128xf32>
    %283 = arith.addf %280, %282 : vector<8x128xf32>
    %284 = math.tanh %283 : vector<8x128xf32>
    %285 = vector.extract_strided_slice %284 {offsets = [0, 0], sizes = [8, 32], strides = [1, 1]} : vector<8x128xf32> to vector<8x32xf32>
    %cst_84 = arith.constant 5.000000e-01 : f32
    %286 = vector.broadcast %cst_84 : f32 to vector<8x32xf32>
    %287 = arith.mulf %286, %285 : vector<8x32xf32>
    %cst_85 = arith.constant 5.000000e-01 : f32
    %288 = vector.broadcast %cst_85 : f32 to vector<8x32xf32>
    %289 = arith.addf %287, %288 : vector<8x32xf32>
    %290 = vector.extract_strided_slice %284 {offsets = [0, 32], sizes = [8, 32], strides = [1, 1]} : vector<8x128xf32> to vector<8x32xf32>
    %cst_86 = arith.constant 5.000000e-01 : f32
    %291 = vector.broadcast %cst_86 : f32 to vector<8x32xf32>
    %292 = arith.mulf %291, %290 : vector<8x32xf32>
    %cst_87 = arith.constant 5.000000e-01 : f32
    %293 = vector.broadcast %cst_87 : f32 to vector<8x32xf32>
    %294 = arith.addf %292, %293 : vector<8x32xf32>
    %295 = vector.extract_strided_slice %284 {offsets = [0, 64], sizes = [8, 32], strides = [1, 1]} : vector<8x128xf32> to vector<8x32xf32>
    %296 = vector.extract_strided_slice %284 {offsets = [0, 96], sizes = [8, 32], strides = [1, 1]} : vector<8x128xf32> to vector<8x32xf32>
    %cst_88 = arith.constant 5.000000e-01 : f32
    %297 = vector.broadcast %cst_88 : f32 to vector<8x32xf32>
    %298 = arith.mulf %297, %296 : vector<8x32xf32>
    %cst_89 = arith.constant 5.000000e-01 : f32
    %299 = vector.broadcast %cst_89 : f32 to vector<8x32xf32>
    %300 = arith.addf %298, %299 : vector<8x32xf32>
    %301 = arith.mulf %294, %277 : vector<8x32xf32>
    %302 = arith.mulf %289, %295 : vector<8x32xf32>
    %303 = arith.addf %301, %302 : vector<8x32xf32>
    %304 = math.tanh %303 : vector<8x32xf32>
    %305 = arith.mulf %300, %304 : vector<8x32xf32>
    %306 = vector.extract_strided_slice %225 {offsets = [24, 0], sizes = [8, 128], strides = [1, 1]} : vector<64x128xf32> to vector<8x128xf32>
    %307 = arith.truncf %305 : vector<8x32xf32> to vector<8x32xbf16>
    %cst_90 = arith.constant dense<0.000000e+00> : vector<8x128xf32>
    %308 = tpu.matmul %307, %221, %cst_90 {dimension_numbers = #tpu.dot_dimension_numbers<[1], [0], [0], [1], [0, 0, 1, 1], [], []>} : vector<8x32xbf16>, vector<32x128xbf16>, vector<8x128xf32> -> vector<8x128xf32>
    %309 = arith.addf %306, %308 : vector<8x128xf32>
    %310 = math.tanh %309 : vector<8x128xf32>
    %311 = vector.extract_strided_slice %310 {offsets = [0, 0], sizes = [8, 32], strides = [1, 1]} : vector<8x128xf32> to vector<8x32xf32>
    %cst_91 = arith.constant 5.000000e-01 : f32
    %312 = vector.broadcast %cst_91 : f32 to vector<8x32xf32>
    %313 = arith.mulf %312, %311 : vector<8x32xf32>
    %cst_92 = arith.constant 5.000000e-01 : f32
    %314 = vector.broadcast %cst_92 : f32 to vector<8x32xf32>
    %315 = arith.addf %313, %314 : vector<8x32xf32>
    %316 = vector.extract_strided_slice %310 {offsets = [0, 32], sizes = [8, 32], strides = [1, 1]} : vector<8x128xf32> to vector<8x32xf32>
    %cst_93 = arith.constant 5.000000e-01 : f32
    %317 = vector.broadcast %cst_93 : f32 to vector<8x32xf32>
    %318 = arith.mulf %317, %316 : vector<8x32xf32>
    %cst_94 = arith.constant 5.000000e-01 : f32
    %319 = vector.broadcast %cst_94 : f32 to vector<8x32xf32>
    %320 = arith.addf %318, %319 : vector<8x32xf32>
    %321 = vector.extract_strided_slice %310 {offsets = [0, 64], sizes = [8, 32], strides = [1, 1]} : vector<8x128xf32> to vector<8x32xf32>
    %322 = vector.extract_strided_slice %310 {offsets = [0, 96], sizes = [8, 32], strides = [1, 1]} : vector<8x128xf32> to vector<8x32xf32>
    %cst_95 = arith.constant 5.000000e-01 : f32
    %323 = vector.broadcast %cst_95 : f32 to vector<8x32xf32>
    %324 = arith.mulf %323, %322 : vector<8x32xf32>
    %cst_96 = arith.constant 5.000000e-01 : f32
    %325 = vector.broadcast %cst_96 : f32 to vector<8x32xf32>
    %326 = arith.addf %324, %325 : vector<8x32xf32>
    %327 = arith.mulf %320, %303 : vector<8x32xf32>
    %328 = arith.mulf %315, %321 : vector<8x32xf32>
    %329 = arith.addf %327, %328 : vector<8x32xf32>
    %330 = math.tanh %329 : vector<8x32xf32>
    %331 = arith.mulf %326, %330 : vector<8x32xf32>
    %332 = vector.extract_strided_slice %225 {offsets = [32, 0], sizes = [8, 128], strides = [1, 1]} : vector<64x128xf32> to vector<8x128xf32>
    %333 = arith.truncf %331 : vector<8x32xf32> to vector<8x32xbf16>
    %cst_97 = arith.constant dense<0.000000e+00> : vector<8x128xf32>
    %334 = tpu.matmul %333, %221, %cst_97 {dimension_numbers = #tpu.dot_dimension_numbers<[1], [0], [0], [1], [0, 0, 1, 1], [], []>} : vector<8x32xbf16>, vector<32x128xbf16>, vector<8x128xf32> -> vector<8x128xf32>
    %335 = arith.addf %332, %334 : vector<8x128xf32>
    %336 = math.tanh %335 : vector<8x128xf32>
    %337 = vector.extract_strided_slice %336 {offsets = [0, 0], sizes = [8, 32], strides = [1, 1]} : vector<8x128xf32> to vector<8x32xf32>
    %cst_98 = arith.constant 5.000000e-01 : f32
    %338 = vector.broadcast %cst_98 : f32 to vector<8x32xf32>
    %339 = arith.mulf %338, %337 : vector<8x32xf32>
    %cst_99 = arith.constant 5.000000e-01 : f32
    %340 = vector.broadcast %cst_99 : f32 to vector<8x32xf32>
    %341 = arith.addf %339, %340 : vector<8x32xf32>
    %342 = vector.extract_strided_slice %336 {offsets = [0, 32], sizes = [8, 32], strides = [1, 1]} : vector<8x128xf32> to vector<8x32xf32>
    %cst_100 = arith.constant 5.000000e-01 : f32
    %343 = vector.broadcast %cst_100 : f32 to vector<8x32xf32>
    %344 = arith.mulf %343, %342 : vector<8x32xf32>
    %cst_101 = arith.constant 5.000000e-01 : f32
    %345 = vector.broadcast %cst_101 : f32 to vector<8x32xf32>
    %346 = arith.addf %344, %345 : vector<8x32xf32>
    %347 = vector.extract_strided_slice %336 {offsets = [0, 64], sizes = [8, 32], strides = [1, 1]} : vector<8x128xf32> to vector<8x32xf32>
    %348 = vector.extract_strided_slice %336 {offsets = [0, 96], sizes = [8, 32], strides = [1, 1]} : vector<8x128xf32> to vector<8x32xf32>
    %cst_102 = arith.constant 5.000000e-01 : f32
    %349 = vector.broadcast %cst_102 : f32 to vector<8x32xf32>
    %350 = arith.mulf %349, %348 : vector<8x32xf32>
    %cst_103 = arith.constant 5.000000e-01 : f32
    %351 = vector.broadcast %cst_103 : f32 to vector<8x32xf32>
    %352 = arith.addf %350, %351 : vector<8x32xf32>
    %353 = arith.mulf %346, %329 : vector<8x32xf32>
    %354 = arith.mulf %341, %347 : vector<8x32xf32>
    %355 = arith.addf %353, %354 : vector<8x32xf32>
    %356 = math.tanh %355 : vector<8x32xf32>
    %357 = arith.mulf %352, %356 : vector<8x32xf32>
    %358 = vector.extract_strided_slice %225 {offsets = [40, 0], sizes = [8, 128], strides = [1, 1]} : vector<64x128xf32> to vector<8x128xf32>
    %359 = arith.truncf %357 : vector<8x32xf32> to vector<8x32xbf16>
    %cst_104 = arith.constant dense<0.000000e+00> : vector<8x128xf32>
    %360 = tpu.matmul %359, %221, %cst_104 {dimension_numbers = #tpu.dot_dimension_numbers<[1], [0], [0], [1], [0, 0, 1, 1], [], []>} : vector<8x32xbf16>, vector<32x128xbf16>, vector<8x128xf32> -> vector<8x128xf32>
    %361 = arith.addf %358, %360 : vector<8x128xf32>
    %362 = math.tanh %361 : vector<8x128xf32>
    %363 = vector.extract_strided_slice %362 {offsets = [0, 0], sizes = [8, 32], strides = [1, 1]} : vector<8x128xf32> to vector<8x32xf32>
    %cst_105 = arith.constant 5.000000e-01 : f32
    %364 = vector.broadcast %cst_105 : f32 to vector<8x32xf32>
    %365 = arith.mulf %364, %363 : vector<8x32xf32>
    %cst_106 = arith.constant 5.000000e-01 : f32
    %366 = vector.broadcast %cst_106 : f32 to vector<8x32xf32>
    %367 = arith.addf %365, %366 : vector<8x32xf32>
    %368 = vector.extract_strided_slice %362 {offsets = [0, 32], sizes = [8, 32], strides = [1, 1]} : vector<8x128xf32> to vector<8x32xf32>
    %cst_107 = arith.constant 5.000000e-01 : f32
    %369 = vector.broadcast %cst_107 : f32 to vector<8x32xf32>
    %370 = arith.mulf %369, %368 : vector<8x32xf32>
    %cst_108 = arith.constant 5.000000e-01 : f32
    %371 = vector.broadcast %cst_108 : f32 to vector<8x32xf32>
    %372 = arith.addf %370, %371 : vector<8x32xf32>
    %373 = vector.extract_strided_slice %362 {offsets = [0, 64], sizes = [8, 32], strides = [1, 1]} : vector<8x128xf32> to vector<8x32xf32>
    %374 = vector.extract_strided_slice %362 {offsets = [0, 96], sizes = [8, 32], strides = [1, 1]} : vector<8x128xf32> to vector<8x32xf32>
    %cst_109 = arith.constant 5.000000e-01 : f32
    %375 = vector.broadcast %cst_109 : f32 to vector<8x32xf32>
    %376 = arith.mulf %375, %374 : vector<8x32xf32>
    %cst_110 = arith.constant 5.000000e-01 : f32
    %377 = vector.broadcast %cst_110 : f32 to vector<8x32xf32>
    %378 = arith.addf %376, %377 : vector<8x32xf32>
    %379 = arith.mulf %372, %355 : vector<8x32xf32>
    %380 = arith.mulf %367, %373 : vector<8x32xf32>
    %381 = arith.addf %379, %380 : vector<8x32xf32>
    %382 = math.tanh %381 : vector<8x32xf32>
    %383 = arith.mulf %378, %382 : vector<8x32xf32>
    %384 = vector.extract_strided_slice %225 {offsets = [48, 0], sizes = [8, 128], strides = [1, 1]} : vector<64x128xf32> to vector<8x128xf32>
    %385 = arith.truncf %383 : vector<8x32xf32> to vector<8x32xbf16>
    %cst_111 = arith.constant dense<0.000000e+00> : vector<8x128xf32>
    %386 = tpu.matmul %385, %221, %cst_111 {dimension_numbers = #tpu.dot_dimension_numbers<[1], [0], [0], [1], [0, 0, 1, 1], [], []>} : vector<8x32xbf16>, vector<32x128xbf16>, vector<8x128xf32> -> vector<8x128xf32>
    %387 = arith.addf %384, %386 : vector<8x128xf32>
    %388 = math.tanh %387 : vector<8x128xf32>
    %389 = vector.extract_strided_slice %388 {offsets = [0, 0], sizes = [8, 32], strides = [1, 1]} : vector<8x128xf32> to vector<8x32xf32>
    %cst_112 = arith.constant 5.000000e-01 : f32
    %390 = vector.broadcast %cst_112 : f32 to vector<8x32xf32>
    %391 = arith.mulf %390, %389 : vector<8x32xf32>
    %cst_113 = arith.constant 5.000000e-01 : f32
    %392 = vector.broadcast %cst_113 : f32 to vector<8x32xf32>
    %393 = arith.addf %391, %392 : vector<8x32xf32>
    %394 = vector.extract_strided_slice %388 {offsets = [0, 32], sizes = [8, 32], strides = [1, 1]} : vector<8x128xf32> to vector<8x32xf32>
    %cst_114 = arith.constant 5.000000e-01 : f32
    %395 = vector.broadcast %cst_114 : f32 to vector<8x32xf32>
    %396 = arith.mulf %395, %394 : vector<8x32xf32>
    %cst_115 = arith.constant 5.000000e-01 : f32
    %397 = vector.broadcast %cst_115 : f32 to vector<8x32xf32>
    %398 = arith.addf %396, %397 : vector<8x32xf32>
    %399 = vector.extract_strided_slice %388 {offsets = [0, 64], sizes = [8, 32], strides = [1, 1]} : vector<8x128xf32> to vector<8x32xf32>
    %400 = vector.extract_strided_slice %388 {offsets = [0, 96], sizes = [8, 32], strides = [1, 1]} : vector<8x128xf32> to vector<8x32xf32>
    %cst_116 = arith.constant 5.000000e-01 : f32
    %401 = vector.broadcast %cst_116 : f32 to vector<8x32xf32>
    %402 = arith.mulf %401, %400 : vector<8x32xf32>
    %cst_117 = arith.constant 5.000000e-01 : f32
    %403 = vector.broadcast %cst_117 : f32 to vector<8x32xf32>
    %404 = arith.addf %402, %403 : vector<8x32xf32>
    %405 = arith.mulf %398, %381 : vector<8x32xf32>
    %406 = arith.mulf %393, %399 : vector<8x32xf32>
    %407 = arith.addf %405, %406 : vector<8x32xf32>
    %408 = math.tanh %407 : vector<8x32xf32>
    %409 = arith.mulf %404, %408 : vector<8x32xf32>
    %410 = vector.extract_strided_slice %225 {offsets = [56, 0], sizes = [8, 128], strides = [1, 1]} : vector<64x128xf32> to vector<8x128xf32>
    %411 = arith.truncf %409 : vector<8x32xf32> to vector<8x32xbf16>
    %cst_118 = arith.constant dense<0.000000e+00> : vector<8x128xf32>
    %412 = tpu.matmul %411, %221, %cst_118 {dimension_numbers = #tpu.dot_dimension_numbers<[1], [0], [0], [1], [0, 0, 1, 1], [], []>} : vector<8x32xbf16>, vector<32x128xbf16>, vector<8x128xf32> -> vector<8x128xf32>
    %413 = arith.addf %410, %412 : vector<8x128xf32>
    %414 = math.tanh %413 : vector<8x128xf32>
    %415 = vector.extract_strided_slice %414 {offsets = [0, 0], sizes = [8, 32], strides = [1, 1]} : vector<8x128xf32> to vector<8x32xf32>
    %cst_119 = arith.constant 5.000000e-01 : f32
    %416 = vector.broadcast %cst_119 : f32 to vector<8x32xf32>
    %417 = arith.mulf %416, %415 : vector<8x32xf32>
    %cst_120 = arith.constant 5.000000e-01 : f32
    %418 = vector.broadcast %cst_120 : f32 to vector<8x32xf32>
    %419 = arith.addf %417, %418 : vector<8x32xf32>
    %420 = vector.extract_strided_slice %414 {offsets = [0, 32], sizes = [8, 32], strides = [1, 1]} : vector<8x128xf32> to vector<8x32xf32>
    %cst_121 = arith.constant 5.000000e-01 : f32
    %421 = vector.broadcast %cst_121 : f32 to vector<8x32xf32>
    %422 = arith.mulf %421, %420 : vector<8x32xf32>
    %cst_122 = arith.constant 5.000000e-01 : f32
    %423 = vector.broadcast %cst_122 : f32 to vector<8x32xf32>
    %424 = arith.addf %422, %423 : vector<8x32xf32>
    %425 = vector.extract_strided_slice %414 {offsets = [0, 64], sizes = [8, 32], strides = [1, 1]} : vector<8x128xf32> to vector<8x32xf32>
    %426 = vector.extract_strided_slice %414 {offsets = [0, 96], sizes = [8, 32], strides = [1, 1]} : vector<8x128xf32> to vector<8x32xf32>
    %cst_123 = arith.constant 5.000000e-01 : f32
    %427 = vector.broadcast %cst_123 : f32 to vector<8x32xf32>
    %428 = arith.mulf %427, %426 : vector<8x32xf32>
    %cst_124 = arith.constant 5.000000e-01 : f32
    %429 = vector.broadcast %cst_124 : f32 to vector<8x32xf32>
    %430 = arith.addf %428, %429 : vector<8x32xf32>
    %431 = arith.mulf %424, %407 : vector<8x32xf32>
    %432 = arith.mulf %419, %425 : vector<8x32xf32>
    %433 = arith.addf %431, %432 : vector<8x32xf32>
    %434 = math.tanh %433 : vector<8x32xf32>
    %435 = arith.mulf %430, %434 : vector<8x32xf32>
    %436 = tpu.concatenate %253, %279, %305, %331, %357, %383, %409, %435 in 0 : vector<8x32xf32>, vector<8x32xf32>, vector<8x32xf32>, vector<8x32xf32>, vector<8x32xf32>, vector<8x32xf32>, vector<8x32xf32>, vector<8x32xf32> -> vector<64x32xf32>
    %437 = arith.truncf %436 : vector<64x32xf32> to vector<64x32xbf16>
    %c112 = arith.constant 112 : index
    %c0_125 = arith.constant 0 : index
    %438 = vector.load %arg1[%c112, %c0_125] : memref<176x128xbf16, #tpu.memory_space<vmem>>, vector<32x128xbf16>
    %c144 = arith.constant 144 : index
    %c0_126 = arith.constant 0 : index
    %439 = vector.load %arg1[%c144, %c0_126] : memref<176x128xbf16, #tpu.memory_space<vmem>>, vector<32x128xbf16>
    %440 = vector.extract_strided_slice %0 {offsets = [2, 0], sizes = [1, 128], strides = [1, 1]} : vector<8x128xf32> to vector<1x128xf32>
    %cst_127 = arith.constant dense<0.000000e+00> : vector<64x128xf32>
    %441 = tpu.matmul %437, %438, %cst_127 {dimension_numbers = #tpu.dot_dimension_numbers<[1], [0], [0], [1], [0, 0, 1, 1], [], []>} : vector<64x32xbf16>, vector<32x128xbf16>, vector<64x128xf32> -> vector<64x128xf32>
    %442 = vector.broadcast %440 : vector<1x128xf32> to vector<64x128xf32>
    %443 = arith.addf %441, %442 : vector<64x128xf32>
    %cst_128 = arith.constant 0.000000e+00 : f32
    %444 = vector.broadcast %cst_128 : f32 to vector<8x32xf32>
    %cst_129 = arith.constant 0.000000e+00 : f32
    %445 = vector.broadcast %cst_129 : f32 to vector<8x32xf32>
    %446 = vector.extract_strided_slice %443 {offsets = [0, 0], sizes = [8, 128], strides = [1, 1]} : vector<64x128xf32> to vector<8x128xf32>
    %447 = arith.truncf %444 : vector<8x32xf32> to vector<8x32xbf16>
    %cst_130 = arith.constant dense<0.000000e+00> : vector<8x128xf32>
    %448 = tpu.matmul %447, %439, %cst_130 {dimension_numbers = #tpu.dot_dimension_numbers<[1], [0], [0], [1], [0, 0, 1, 1], [], []>} : vector<8x32xbf16>, vector<32x128xbf16>, vector<8x128xf32> -> vector<8x128xf32>
    %449 = arith.addf %446, %448 : vector<8x128xf32>
    %450 = math.tanh %449 : vector<8x128xf32>
    %451 = vector.extract_strided_slice %450 {offsets = [0, 0], sizes = [8, 32], strides = [1, 1]} : vector<8x128xf32> to vector<8x32xf32>
    %cst_131 = arith.constant 5.000000e-01 : f32
    %452 = vector.broadcast %cst_131 : f32 to vector<8x32xf32>
    %453 = arith.mulf %452, %451 : vector<8x32xf32>
    %cst_132 = arith.constant 5.000000e-01 : f32
    %454 = vector.broadcast %cst_132 : f32 to vector<8x32xf32>
    %455 = arith.addf %453, %454 : vector<8x32xf32>
    %456 = vector.extract_strided_slice %450 {offsets = [0, 32], sizes = [8, 32], strides = [1, 1]} : vector<8x128xf32> to vector<8x32xf32>
    %cst_133 = arith.constant 5.000000e-01 : f32
    %457 = vector.broadcast %cst_133 : f32 to vector<8x32xf32>
    %458 = arith.mulf %457, %456 : vector<8x32xf32>
    %cst_134 = arith.constant 5.000000e-01 : f32
    %459 = vector.broadcast %cst_134 : f32 to vector<8x32xf32>
    %460 = arith.addf %458, %459 : vector<8x32xf32>
    %461 = vector.extract_strided_slice %450 {offsets = [0, 64], sizes = [8, 32], strides = [1, 1]} : vector<8x128xf32> to vector<8x32xf32>
    %462 = vector.extract_strided_slice %450 {offsets = [0, 96], sizes = [8, 32], strides = [1, 1]} : vector<8x128xf32> to vector<8x32xf32>
    %cst_135 = arith.constant 5.000000e-01 : f32
    %463 = vector.broadcast %cst_135 : f32 to vector<8x32xf32>
    %464 = arith.mulf %463, %462 : vector<8x32xf32>
    %cst_136 = arith.constant 5.000000e-01 : f32
    %465 = vector.broadcast %cst_136 : f32 to vector<8x32xf32>
    %466 = arith.addf %464, %465 : vector<8x32xf32>
    %467 = arith.mulf %460, %445 : vector<8x32xf32>
    %468 = arith.mulf %455, %461 : vector<8x32xf32>
    %469 = arith.addf %467, %468 : vector<8x32xf32>
    %470 = math.tanh %469 : vector<8x32xf32>
    %471 = arith.mulf %466, %470 : vector<8x32xf32>
    %472 = vector.extract_strided_slice %443 {offsets = [8, 0], sizes = [8, 128], strides = [1, 1]} : vector<64x128xf32> to vector<8x128xf32>
    %473 = arith.truncf %471 : vector<8x32xf32> to vector<8x32xbf16>
    %cst_137 = arith.constant dense<0.000000e+00> : vector<8x128xf32>
    %474 = tpu.matmul %473, %439, %cst_137 {dimension_numbers = #tpu.dot_dimension_numbers<[1], [0], [0], [1], [0, 0, 1, 1], [], []>} : vector<8x32xbf16>, vector<32x128xbf16>, vector<8x128xf32> -> vector<8x128xf32>
    %475 = arith.addf %472, %474 : vector<8x128xf32>
    %476 = math.tanh %475 : vector<8x128xf32>
    %477 = vector.extract_strided_slice %476 {offsets = [0, 0], sizes = [8, 32], strides = [1, 1]} : vector<8x128xf32> to vector<8x32xf32>
    %cst_138 = arith.constant 5.000000e-01 : f32
    %478 = vector.broadcast %cst_138 : f32 to vector<8x32xf32>
    %479 = arith.mulf %478, %477 : vector<8x32xf32>
    %cst_139 = arith.constant 5.000000e-01 : f32
    %480 = vector.broadcast %cst_139 : f32 to vector<8x32xf32>
    %481 = arith.addf %479, %480 : vector<8x32xf32>
    %482 = vector.extract_strided_slice %476 {offsets = [0, 32], sizes = [8, 32], strides = [1, 1]} : vector<8x128xf32> to vector<8x32xf32>
    %cst_140 = arith.constant 5.000000e-01 : f32
    %483 = vector.broadcast %cst_140 : f32 to vector<8x32xf32>
    %484 = arith.mulf %483, %482 : vector<8x32xf32>
    %cst_141 = arith.constant 5.000000e-01 : f32
    %485 = vector.broadcast %cst_141 : f32 to vector<8x32xf32>
    %486 = arith.addf %484, %485 : vector<8x32xf32>
    %487 = vector.extract_strided_slice %476 {offsets = [0, 64], sizes = [8, 32], strides = [1, 1]} : vector<8x128xf32> to vector<8x32xf32>
    %488 = vector.extract_strided_slice %476 {offsets = [0, 96], sizes = [8, 32], strides = [1, 1]} : vector<8x128xf32> to vector<8x32xf32>
    %cst_142 = arith.constant 5.000000e-01 : f32
    %489 = vector.broadcast %cst_142 : f32 to vector<8x32xf32>
    %490 = arith.mulf %489, %488 : vector<8x32xf32>
    %cst_143 = arith.constant 5.000000e-01 : f32
    %491 = vector.broadcast %cst_143 : f32 to vector<8x32xf32>
    %492 = arith.addf %490, %491 : vector<8x32xf32>
    %493 = arith.mulf %486, %469 : vector<8x32xf32>
    %494 = arith.mulf %481, %487 : vector<8x32xf32>
    %495 = arith.addf %493, %494 : vector<8x32xf32>
    %496 = math.tanh %495 : vector<8x32xf32>
    %497 = arith.mulf %492, %496 : vector<8x32xf32>
    %498 = vector.extract_strided_slice %443 {offsets = [16, 0], sizes = [8, 128], strides = [1, 1]} : vector<64x128xf32> to vector<8x128xf32>
    %499 = arith.truncf %497 : vector<8x32xf32> to vector<8x32xbf16>
    %cst_144 = arith.constant dense<0.000000e+00> : vector<8x128xf32>
    %500 = tpu.matmul %499, %439, %cst_144 {dimension_numbers = #tpu.dot_dimension_numbers<[1], [0], [0], [1], [0, 0, 1, 1], [], []>} : vector<8x32xbf16>, vector<32x128xbf16>, vector<8x128xf32> -> vector<8x128xf32>
    %501 = arith.addf %498, %500 : vector<8x128xf32>
    %502 = math.tanh %501 : vector<8x128xf32>
    %503 = vector.extract_strided_slice %502 {offsets = [0, 0], sizes = [8, 32], strides = [1, 1]} : vector<8x128xf32> to vector<8x32xf32>
    %cst_145 = arith.constant 5.000000e-01 : f32
    %504 = vector.broadcast %cst_145 : f32 to vector<8x32xf32>
    %505 = arith.mulf %504, %503 : vector<8x32xf32>
    %cst_146 = arith.constant 5.000000e-01 : f32
    %506 = vector.broadcast %cst_146 : f32 to vector<8x32xf32>
    %507 = arith.addf %505, %506 : vector<8x32xf32>
    %508 = vector.extract_strided_slice %502 {offsets = [0, 32], sizes = [8, 32], strides = [1, 1]} : vector<8x128xf32> to vector<8x32xf32>
    %cst_147 = arith.constant 5.000000e-01 : f32
    %509 = vector.broadcast %cst_147 : f32 to vector<8x32xf32>
    %510 = arith.mulf %509, %508 : vector<8x32xf32>
    %cst_148 = arith.constant 5.000000e-01 : f32
    %511 = vector.broadcast %cst_148 : f32 to vector<8x32xf32>
    %512 = arith.addf %510, %511 : vector<8x32xf32>
    %513 = vector.extract_strided_slice %502 {offsets = [0, 64], sizes = [8, 32], strides = [1, 1]} : vector<8x128xf32> to vector<8x32xf32>
    %514 = vector.extract_strided_slice %502 {offsets = [0, 96], sizes = [8, 32], strides = [1, 1]} : vector<8x128xf32> to vector<8x32xf32>
    %cst_149 = arith.constant 5.000000e-01 : f32
    %515 = vector.broadcast %cst_149 : f32 to vector<8x32xf32>
    %516 = arith.mulf %515, %514 : vector<8x32xf32>
    %cst_150 = arith.constant 5.000000e-01 : f32
    %517 = vector.broadcast %cst_150 : f32 to vector<8x32xf32>
    %518 = arith.addf %516, %517 : vector<8x32xf32>
    %519 = arith.mulf %512, %495 : vector<8x32xf32>
    %520 = arith.mulf %507, %513 : vector<8x32xf32>
    %521 = arith.addf %519, %520 : vector<8x32xf32>
    %522 = math.tanh %521 : vector<8x32xf32>
    %523 = arith.mulf %518, %522 : vector<8x32xf32>
    %524 = vector.extract_strided_slice %443 {offsets = [24, 0], sizes = [8, 128], strides = [1, 1]} : vector<64x128xf32> to vector<8x128xf32>
    %525 = arith.truncf %523 : vector<8x32xf32> to vector<8x32xbf16>
    %cst_151 = arith.constant dense<0.000000e+00> : vector<8x128xf32>
    %526 = tpu.matmul %525, %439, %cst_151 {dimension_numbers = #tpu.dot_dimension_numbers<[1], [0], [0], [1], [0, 0, 1, 1], [], []>} : vector<8x32xbf16>, vector<32x128xbf16>, vector<8x128xf32> -> vector<8x128xf32>
    %527 = arith.addf %524, %526 : vector<8x128xf32>
    %528 = math.tanh %527 : vector<8x128xf32>
    %529 = vector.extract_strided_slice %528 {offsets = [0, 0], sizes = [8, 32], strides = [1, 1]} : vector<8x128xf32> to vector<8x32xf32>
    %cst_152 = arith.constant 5.000000e-01 : f32
    %530 = vector.broadcast %cst_152 : f32 to vector<8x32xf32>
    %531 = arith.mulf %530, %529 : vector<8x32xf32>
    %cst_153 = arith.constant 5.000000e-01 : f32
    %532 = vector.broadcast %cst_153 : f32 to vector<8x32xf32>
    %533 = arith.addf %531, %532 : vector<8x32xf32>
    %534 = vector.extract_strided_slice %528 {offsets = [0, 32], sizes = [8, 32], strides = [1, 1]} : vector<8x128xf32> to vector<8x32xf32>
    %cst_154 = arith.constant 5.000000e-01 : f32
    %535 = vector.broadcast %cst_154 : f32 to vector<8x32xf32>
    %536 = arith.mulf %535, %534 : vector<8x32xf32>
    %cst_155 = arith.constant 5.000000e-01 : f32
    %537 = vector.broadcast %cst_155 : f32 to vector<8x32xf32>
    %538 = arith.addf %536, %537 : vector<8x32xf32>
    %539 = vector.extract_strided_slice %528 {offsets = [0, 64], sizes = [8, 32], strides = [1, 1]} : vector<8x128xf32> to vector<8x32xf32>
    %540 = vector.extract_strided_slice %528 {offsets = [0, 96], sizes = [8, 32], strides = [1, 1]} : vector<8x128xf32> to vector<8x32xf32>
    %cst_156 = arith.constant 5.000000e-01 : f32
    %541 = vector.broadcast %cst_156 : f32 to vector<8x32xf32>
    %542 = arith.mulf %541, %540 : vector<8x32xf32>
    %cst_157 = arith.constant 5.000000e-01 : f32
    %543 = vector.broadcast %cst_157 : f32 to vector<8x32xf32>
    %544 = arith.addf %542, %543 : vector<8x32xf32>
    %545 = arith.mulf %538, %521 : vector<8x32xf32>
    %546 = arith.mulf %533, %539 : vector<8x32xf32>
    %547 = arith.addf %545, %546 : vector<8x32xf32>
    %548 = math.tanh %547 : vector<8x32xf32>
    %549 = arith.mulf %544, %548 : vector<8x32xf32>
    %550 = vector.extract_strided_slice %443 {offsets = [32, 0], sizes = [8, 128], strides = [1, 1]} : vector<64x128xf32> to vector<8x128xf32>
    %551 = arith.truncf %549 : vector<8x32xf32> to vector<8x32xbf16>
    %cst_158 = arith.constant dense<0.000000e+00> : vector<8x128xf32>
    %552 = tpu.matmul %551, %439, %cst_158 {dimension_numbers = #tpu.dot_dimension_numbers<[1], [0], [0], [1], [0, 0, 1, 1], [], []>} : vector<8x32xbf16>, vector<32x128xbf16>, vector<8x128xf32> -> vector<8x128xf32>
    %553 = arith.addf %550, %552 : vector<8x128xf32>
    %554 = math.tanh %553 : vector<8x128xf32>
    %555 = vector.extract_strided_slice %554 {offsets = [0, 0], sizes = [8, 32], strides = [1, 1]} : vector<8x128xf32> to vector<8x32xf32>
    %cst_159 = arith.constant 5.000000e-01 : f32
    %556 = vector.broadcast %cst_159 : f32 to vector<8x32xf32>
    %557 = arith.mulf %556, %555 : vector<8x32xf32>
    %cst_160 = arith.constant 5.000000e-01 : f32
    %558 = vector.broadcast %cst_160 : f32 to vector<8x32xf32>
    %559 = arith.addf %557, %558 : vector<8x32xf32>
    %560 = vector.extract_strided_slice %554 {offsets = [0, 32], sizes = [8, 32], strides = [1, 1]} : vector<8x128xf32> to vector<8x32xf32>
    %cst_161 = arith.constant 5.000000e-01 : f32
    %561 = vector.broadcast %cst_161 : f32 to vector<8x32xf32>
    %562 = arith.mulf %561, %560 : vector<8x32xf32>
    %cst_162 = arith.constant 5.000000e-01 : f32
    %563 = vector.broadcast %cst_162 : f32 to vector<8x32xf32>
    %564 = arith.addf %562, %563 : vector<8x32xf32>
    %565 = vector.extract_strided_slice %554 {offsets = [0, 64], sizes = [8, 32], strides = [1, 1]} : vector<8x128xf32> to vector<8x32xf32>
    %566 = vector.extract_strided_slice %554 {offsets = [0, 96], sizes = [8, 32], strides = [1, 1]} : vector<8x128xf32> to vector<8x32xf32>
    %cst_163 = arith.constant 5.000000e-01 : f32
    %567 = vector.broadcast %cst_163 : f32 to vector<8x32xf32>
    %568 = arith.mulf %567, %566 : vector<8x32xf32>
    %cst_164 = arith.constant 5.000000e-01 : f32
    %569 = vector.broadcast %cst_164 : f32 to vector<8x32xf32>
    %570 = arith.addf %568, %569 : vector<8x32xf32>
    %571 = arith.mulf %564, %547 : vector<8x32xf32>
    %572 = arith.mulf %559, %565 : vector<8x32xf32>
    %573 = arith.addf %571, %572 : vector<8x32xf32>
    %574 = math.tanh %573 : vector<8x32xf32>
    %575 = arith.mulf %570, %574 : vector<8x32xf32>
    %576 = vector.extract_strided_slice %443 {offsets = [40, 0], sizes = [8, 128], strides = [1, 1]} : vector<64x128xf32> to vector<8x128xf32>
    %577 = arith.truncf %575 : vector<8x32xf32> to vector<8x32xbf16>
    %cst_165 = arith.constant dense<0.000000e+00> : vector<8x128xf32>
    %578 = tpu.matmul %577, %439, %cst_165 {dimension_numbers = #tpu.dot_dimension_numbers<[1], [0], [0], [1], [0, 0, 1, 1], [], []>} : vector<8x32xbf16>, vector<32x128xbf16>, vector<8x128xf32> -> vector<8x128xf32>
    %579 = arith.addf %576, %578 : vector<8x128xf32>
    %580 = math.tanh %579 : vector<8x128xf32>
    %581 = vector.extract_strided_slice %580 {offsets = [0, 0], sizes = [8, 32], strides = [1, 1]} : vector<8x128xf32> to vector<8x32xf32>
    %cst_166 = arith.constant 5.000000e-01 : f32
    %582 = vector.broadcast %cst_166 : f32 to vector<8x32xf32>
    %583 = arith.mulf %582, %581 : vector<8x32xf32>
    %cst_167 = arith.constant 5.000000e-01 : f32
    %584 = vector.broadcast %cst_167 : f32 to vector<8x32xf32>
    %585 = arith.addf %583, %584 : vector<8x32xf32>
    %586 = vector.extract_strided_slice %580 {offsets = [0, 32], sizes = [8, 32], strides = [1, 1]} : vector<8x128xf32> to vector<8x32xf32>
    %cst_168 = arith.constant 5.000000e-01 : f32
    %587 = vector.broadcast %cst_168 : f32 to vector<8x32xf32>
    %588 = arith.mulf %587, %586 : vector<8x32xf32>
    %cst_169 = arith.constant 5.000000e-01 : f32
    %589 = vector.broadcast %cst_169 : f32 to vector<8x32xf32>
    %590 = arith.addf %588, %589 : vector<8x32xf32>
    %591 = vector.extract_strided_slice %580 {offsets = [0, 64], sizes = [8, 32], strides = [1, 1]} : vector<8x128xf32> to vector<8x32xf32>
    %592 = vector.extract_strided_slice %580 {offsets = [0, 96], sizes = [8, 32], strides = [1, 1]} : vector<8x128xf32> to vector<8x32xf32>
    %cst_170 = arith.constant 5.000000e-01 : f32
    %593 = vector.broadcast %cst_170 : f32 to vector<8x32xf32>
    %594 = arith.mulf %593, %592 : vector<8x32xf32>
    %cst_171 = arith.constant 5.000000e-01 : f32
    %595 = vector.broadcast %cst_171 : f32 to vector<8x32xf32>
    %596 = arith.addf %594, %595 : vector<8x32xf32>
    %597 = arith.mulf %590, %573 : vector<8x32xf32>
    %598 = arith.mulf %585, %591 : vector<8x32xf32>
    %599 = arith.addf %597, %598 : vector<8x32xf32>
    %600 = math.tanh %599 : vector<8x32xf32>
    %601 = arith.mulf %596, %600 : vector<8x32xf32>
    %602 = vector.extract_strided_slice %443 {offsets = [48, 0], sizes = [8, 128], strides = [1, 1]} : vector<64x128xf32> to vector<8x128xf32>
    %603 = arith.truncf %601 : vector<8x32xf32> to vector<8x32xbf16>
    %cst_172 = arith.constant dense<0.000000e+00> : vector<8x128xf32>
    %604 = tpu.matmul %603, %439, %cst_172 {dimension_numbers = #tpu.dot_dimension_numbers<[1], [0], [0], [1], [0, 0, 1, 1], [], []>} : vector<8x32xbf16>, vector<32x128xbf16>, vector<8x128xf32> -> vector<8x128xf32>
    %605 = arith.addf %602, %604 : vector<8x128xf32>
    %606 = math.tanh %605 : vector<8x128xf32>
    %607 = vector.extract_strided_slice %606 {offsets = [0, 0], sizes = [8, 32], strides = [1, 1]} : vector<8x128xf32> to vector<8x32xf32>
    %cst_173 = arith.constant 5.000000e-01 : f32
    %608 = vector.broadcast %cst_173 : f32 to vector<8x32xf32>
    %609 = arith.mulf %608, %607 : vector<8x32xf32>
    %cst_174 = arith.constant 5.000000e-01 : f32
    %610 = vector.broadcast %cst_174 : f32 to vector<8x32xf32>
    %611 = arith.addf %609, %610 : vector<8x32xf32>
    %612 = vector.extract_strided_slice %606 {offsets = [0, 32], sizes = [8, 32], strides = [1, 1]} : vector<8x128xf32> to vector<8x32xf32>
    %cst_175 = arith.constant 5.000000e-01 : f32
    %613 = vector.broadcast %cst_175 : f32 to vector<8x32xf32>
    %614 = arith.mulf %613, %612 : vector<8x32xf32>
    %cst_176 = arith.constant 5.000000e-01 : f32
    %615 = vector.broadcast %cst_176 : f32 to vector<8x32xf32>
    %616 = arith.addf %614, %615 : vector<8x32xf32>
    %617 = vector.extract_strided_slice %606 {offsets = [0, 64], sizes = [8, 32], strides = [1, 1]} : vector<8x128xf32> to vector<8x32xf32>
    %618 = vector.extract_strided_slice %606 {offsets = [0, 96], sizes = [8, 32], strides = [1, 1]} : vector<8x128xf32> to vector<8x32xf32>
    %cst_177 = arith.constant 5.000000e-01 : f32
    %619 = vector.broadcast %cst_177 : f32 to vector<8x32xf32>
    %620 = arith.mulf %619, %618 : vector<8x32xf32>
    %cst_178 = arith.constant 5.000000e-01 : f32
    %621 = vector.broadcast %cst_178 : f32 to vector<8x32xf32>
    %622 = arith.addf %620, %621 : vector<8x32xf32>
    %623 = arith.mulf %616, %599 : vector<8x32xf32>
    %624 = arith.mulf %611, %617 : vector<8x32xf32>
    %625 = arith.addf %623, %624 : vector<8x32xf32>
    %626 = math.tanh %625 : vector<8x32xf32>
    %627 = arith.mulf %622, %626 : vector<8x32xf32>
    %628 = vector.extract_strided_slice %443 {offsets = [56, 0], sizes = [8, 128], strides = [1, 1]} : vector<64x128xf32> to vector<8x128xf32>
    %629 = arith.truncf %627 : vector<8x32xf32> to vector<8x32xbf16>
    %cst_179 = arith.constant dense<0.000000e+00> : vector<8x128xf32>
    %630 = tpu.matmul %629, %439, %cst_179 {dimension_numbers = #tpu.dot_dimension_numbers<[1], [0], [0], [1], [0, 0, 1, 1], [], []>} : vector<8x32xbf16>, vector<32x128xbf16>, vector<8x128xf32> -> vector<8x128xf32>
    %631 = arith.addf %628, %630 : vector<8x128xf32>
    %632 = math.tanh %631 : vector<8x128xf32>
    %633 = vector.extract_strided_slice %632 {offsets = [0, 0], sizes = [8, 32], strides = [1, 1]} : vector<8x128xf32> to vector<8x32xf32>
    %cst_180 = arith.constant 5.000000e-01 : f32
    %634 = vector.broadcast %cst_180 : f32 to vector<8x32xf32>
    %635 = arith.mulf %634, %633 : vector<8x32xf32>
    %cst_181 = arith.constant 5.000000e-01 : f32
    %636 = vector.broadcast %cst_181 : f32 to vector<8x32xf32>
    %637 = arith.addf %635, %636 : vector<8x32xf32>
    %638 = vector.extract_strided_slice %632 {offsets = [0, 32], sizes = [8, 32], strides = [1, 1]} : vector<8x128xf32> to vector<8x32xf32>
    %cst_182 = arith.constant 5.000000e-01 : f32
    %639 = vector.broadcast %cst_182 : f32 to vector<8x32xf32>
    %640 = arith.mulf %639, %638 : vector<8x32xf32>
    %cst_183 = arith.constant 5.000000e-01 : f32
    %641 = vector.broadcast %cst_183 : f32 to vector<8x32xf32>
    %642 = arith.addf %640, %641 : vector<8x32xf32>
    %643 = vector.extract_strided_slice %632 {offsets = [0, 64], sizes = [8, 32], strides = [1, 1]} : vector<8x128xf32> to vector<8x32xf32>
    %644 = vector.extract_strided_slice %632 {offsets = [0, 96], sizes = [8, 32], strides = [1, 1]} : vector<8x128xf32> to vector<8x32xf32>
    %cst_184 = arith.constant 5.000000e-01 : f32
    %645 = vector.broadcast %cst_184 : f32 to vector<8x32xf32>
    %646 = arith.mulf %645, %644 : vector<8x32xf32>
    %cst_185 = arith.constant 5.000000e-01 : f32
    %647 = vector.broadcast %cst_185 : f32 to vector<8x32xf32>
    %648 = arith.addf %646, %647 : vector<8x32xf32>
    %649 = arith.mulf %642, %625 : vector<8x32xf32>
    %650 = arith.mulf %637, %643 : vector<8x32xf32>
    %651 = arith.addf %649, %650 : vector<8x32xf32>
    %652 = math.tanh %651 : vector<8x32xf32>
    %653 = arith.mulf %648, %652 : vector<8x32xf32>
    %cst_186 = arith.constant dense<0.000000e+00> : vector<8xf32>
    %654 = vector.multi_reduction <add>, %653, %cst_186 [1] : vector<8x32xf32> to vector<8xf32>
    %655 = vector.shape_cast %654 : vector<8xf32> to vector<8x1xf32>
    %cst_187 = arith.constant 3.200000e+01 : f32
    %656 = vector.broadcast %cst_187 : f32 to vector<8x1xf32>
    %657 = arith.divf %655, %656 : vector<8x1xf32>
    %658 = vector.broadcast %657 : vector<8x1xf32> to vector<8x32xf32>
    %659 = arith.subf %653, %658 : vector<8x32xf32>
    %660 = arith.mulf %659, %659 : vector<8x32xf32>
    %cst_188 = arith.constant dense<0.000000e+00> : vector<8xf32>
    %661 = vector.multi_reduction <add>, %660, %cst_188 [1] : vector<8x32xf32> to vector<8xf32>
    %662 = vector.shape_cast %661 : vector<8xf32> to vector<8x1xf32>
    %cst_189 = arith.constant 3.200000e+01 : f32
    %663 = vector.broadcast %cst_189 : f32 to vector<8x1xf32>
    %664 = arith.divf %662, %663 : vector<8x1xf32>
    %665 = vector.broadcast %657 : vector<8x1xf32> to vector<8x32xf32>
    %666 = arith.subf %653, %665 : vector<8x32xf32>
    %cst_190 = arith.constant 9.99999974E-6 : f32
    %667 = vector.broadcast %cst_190 : f32 to vector<8x1xf32>
    %668 = arith.addf %664, %667 : vector<8x1xf32>
    %669 = math.rsqrt %668 : vector<8x1xf32>
    %670 = vector.broadcast %669 : vector<8x1xf32> to vector<8x32xf32>
    %671 = arith.mulf %666, %670 : vector<8x32xf32>
    %672 = vector.extract_strided_slice %0 {offsets = [3, 0], sizes = [1, 32], strides = [1, 1]} : vector<8x128xf32> to vector<1x32xf32>
    %673 = vector.broadcast %672 : vector<1x32xf32> to vector<8x32xf32>
    %674 = arith.mulf %671, %673 : vector<8x32xf32>
    %675 = vector.extract_strided_slice %0 {offsets = [4, 0], sizes = [1, 32], strides = [1, 1]} : vector<8x128xf32> to vector<1x32xf32>
    %676 = vector.broadcast %675 : vector<1x32xf32> to vector<8x32xf32>
    %677 = arith.addf %674, %676 : vector<8x32xf32>
    %c0_191 = arith.constant 0 : index
    %c0_192 = arith.constant 0 : index
    %678 = vector.load %arg2[%c0_191, %c0_192] : memref<288x128xbf16, #tpu.memory_space<vmem>>, vector<32x128xbf16>
    %c32 = arith.constant 32 : index
    %c0_193 = arith.constant 0 : index
    %679 = vector.load %arg2[%c32, %c0_193] : memref<288x128xbf16, #tpu.memory_space<vmem>>, vector<128x128xbf16>
    %c160 = arith.constant 160 : index
    %c0_194 = arith.constant 0 : index
    %680 = vector.load %arg2[%c160, %c0_194] : memref<288x128xbf16, #tpu.memory_space<vmem>>, vector<128x128xbf16>
    %681 = arith.truncf %677 : vector<8x32xf32> to vector<8x32xbf16>
    %cst_195 = arith.constant dense<0.000000e+00> : vector<8x128xf32>
    %682 = tpu.matmul %681, %678, %cst_195 {dimension_numbers = #tpu.dot_dimension_numbers<[1], [0], [0], [1], [0, 0, 1, 1], [], []>} : vector<8x32xbf16>, vector<32x128xbf16>, vector<8x128xf32> -> vector<8x128xf32>
    %683 = vector.extract_strided_slice %0 {offsets = [5, 0], sizes = [1, 128], strides = [1, 1]} : vector<8x128xf32> to vector<1x128xf32>
    %684 = vector.broadcast %683 : vector<1x128xf32> to vector<8x128xf32>
    %685 = arith.addf %682, %684 : vector<8x128xf32>
    %cst_196 = arith.constant 5.000000e-01 : f32
    %686 = vector.broadcast %cst_196 : f32 to vector<8x128xf32>
    %687 = arith.mulf %686, %685 : vector<8x128xf32>
    %688 = math.tanh %687 : vector<8x128xf32>
    %cst_197 = arith.constant 5.000000e-01 : f32
    %689 = vector.broadcast %cst_197 : f32 to vector<8x128xf32>
    %690 = arith.mulf %689, %688 : vector<8x128xf32>
    %cst_198 = arith.constant 5.000000e-01 : f32
    %691 = vector.broadcast %cst_198 : f32 to vector<8x128xf32>
    %692 = arith.addf %690, %691 : vector<8x128xf32>
    %693 = arith.mulf %685, %692 : vector<8x128xf32>
    %694 = arith.truncf %693 : vector<8x128xf32> to vector<8x128xbf16>
    %cst_199 = arith.constant dense<0.000000e+00> : vector<8x128xf32>
    %695 = tpu.matmul %694, %679, %cst_199 {dimension_numbers = #tpu.dot_dimension_numbers<[1], [0], [0], [1], [0, 0, 1, 1], [], []>} : vector<8x128xbf16>, vector<128x128xbf16>, vector<8x128xf32> -> vector<8x128xf32>
    %696 = vector.extract_strided_slice %0 {offsets = [6, 0], sizes = [1, 128], strides = [1, 1]} : vector<8x128xf32> to vector<1x128xf32>
    %697 = vector.broadcast %696 : vector<1x128xf32> to vector<8x128xf32>
    %698 = arith.addf %695, %697 : vector<8x128xf32>
    %cst_200 = arith.constant 5.000000e-01 : f32
    %699 = vector.broadcast %cst_200 : f32 to vector<8x128xf32>
    %700 = arith.mulf %699, %698 : vector<8x128xf32>
    %701 = math.tanh %700 : vector<8x128xf32>
    %cst_201 = arith.constant 5.000000e-01 : f32
    %702 = vector.broadcast %cst_201 : f32 to vector<8x128xf32>
    %703 = arith.mulf %702, %701 : vector<8x128xf32>
    %cst_202 = arith.constant 5.000000e-01 : f32
    %704 = vector.broadcast %cst_202 : f32 to vector<8x128xf32>
    %705 = arith.addf %703, %704 : vector<8x128xf32>
    %706 = arith.mulf %698, %705 : vector<8x128xf32>
    %707 = arith.truncf %706 : vector<8x128xf32> to vector<8x128xbf16>
    %cst_203 = arith.constant dense<0.000000e+00> : vector<8x128xf32>
    %708 = tpu.matmul %707, %680, %cst_203 {dimension_numbers = #tpu.dot_dimension_numbers<[1], [0], [0], [1], [0, 0, 1, 1], [], []>} : vector<8x128xbf16>, vector<128x128xbf16>, vector<8x128xf32> -> vector<8x128xf32>
    %709 = vector.extract_strided_slice %0 {offsets = [7, 0], sizes = [1, 128], strides = [1, 1]} : vector<8x128xf32> to vector<1x128xf32>
    %710 = vector.broadcast %709 : vector<1x128xf32> to vector<8x128xf32>
    %711 = arith.addf %708, %710 : vector<8x128xf32>
    %c0_204 = arith.constant 0 : index
    %c0_205 = arith.constant 0 : index
    %712 = vector.load %arg4[%c0_204, %c0_205] : memref<8x128xf32, #tpu.memory_space<vmem>>, vector<8x128xf32>
    tpu.vector_store %arg4[%c0_204, %c0_205], %711 {strides = array<i32>} : memref<8x128xf32, #tpu.memory_space<vmem>>, vector<8x128xf32>,
    return
  }
}

</mosaic_0001>

<bundles_post_ra>
// kernel: detailed_bitcoin_predictor.1
= control target key start
LH: loop header
LB: loop body
LE: loop exit
PB: predicated region body
PF: predicated region fallthrough
CT: control target
= control target key end

     0   :  { %9 = vsyncpa [#allocation3], 0  ;;  %s3608_s0 = inlined_call_operand.vmem [shape: bf16[64,16], index: 0, kind: input, shape index: {}]   ;;  %s3609_s1 = inlined_call_operand.hbm [shape: bf16[176,128], index: 1, kind: input, shape index: {}]   ;;  %s3610_s2 = inlined_call_operand.hbm [shape: bf16[288,128], index: 2, kind: input, shape index: {}]   ;;  %s3611_s3 = inlined_call_operand.vmem [shape: f32[8,128], index: 3, kind: input, shape index: {}]   ;;  %s3612_s4 = inlined_call_operand.vmem [shape: f32[8,128], index: 4, kind: output, shape index: {}]  }
   0x1   :  { %10 = vsyncpa [#allocation5], 0  ;;  %s3036_s15 = smov [#allocation2]  }
   0x2   :  { %s18_s16 = sshll.u32 %s3036_s15, 4  ;;  %s19_s16 = int_to_ptr.vmem [resolvable:$true] %s18_s16 }
   0x3   :  { %s3000_s17 = scalar_lea.vmem %s19_s16, 1408  ;;  %p3005_p1 = scmp.lt.s32.totalorder %s19_s16, %s19_s16 }
   0x4   :  { %p3001_p0 = scmp.ne.s32.totalorder %s19_s16, %s3000_s17  ;;  %p3006_p2 = scmp.lt.s32.totalorder %s3000_s17, %s3000_s17 }
   0x6   :  { %p3007_p3 = por %p3006_p2, %p3005_p1 }
   0x8   :  { %p3008_p4 = pnand %p3007_p3, %p3001_p0 }
   0xa   :  { %3011 = shalt.err (!%p3008_p4)
}
   0xb   :  { %s3037_s18 = smov 64   ;;  %s3038_s19 = smov 4  }
   0xc   :  { %24 = dma.hbm_to_vmem [thread:$0]  %s3609_s1, 1408, %s19_s16, [#allocation3], %s3037_s18, %s3037_s18, %s3038_s19  }
   0xd   :  { %s3039_s22 = smov [#allocation4]  }
   0xe   :  { %s30_s23 = sshll.u32 %s3039_s22, 4  ;;  %s31_s23 = int_to_ptr.vmem [resolvable:$true] %s30_s23 }
   0xf   :  { %s3020_s24 = scalar_lea.vmem %s31_s23, 2304  ;;  %p3025_p6 = scmp.lt.s32.totalorder %s31_s23, %s31_s23 }
  0x10   :  { %p3021_p5 = scmp.ne.s32.totalorder %s31_s23, %s3020_s24  ;;  %p3026_p7 = scmp.lt.s32.totalorder %s3020_s24, %s3020_s24 }
  0x12   :  { %p3027_p8 = por %p3026_p7, %p3025_p6 }
  0x14   :  { %p3028_p9 = pnand %p3027_p8, %p3021_p5 }
  0x16   :  { %3031 = shalt.err (!%p3028_p9)
}
  0x17   :  { %36 = dma.hbm_to_vmem [thread:$0]  %s3610_s2, 2304, %s31_s23, [#allocation5], %s3037_s18, %s3037_s18, %s3038_s19  }
  0x18   :  { %3032 = dma.done.wait [#allocation3], 1408  }
  0x19   :  { %3033 = vsyncadd [#allocation3], 4294965888 }
  0x1a   :  { %3034 = dma.done.wait [#allocation5], 2304  }
  0x1b   :  { %3035 = vsyncadd [#allocation5], 4294964992  ;;  %v3040_v0 = vmov 0.0   ;;  %vm3041_vm0 = vmmov 0   ;;  %v2856_v1 = vld [vmem:[#allocation2] sm:$0xff]   ;;  %v3083_v2 = vld [vmem:[#allocation2 + $0x10] sm:$0xff]   ;;  %v61_v7 = vlaneseq }
  0x1c   :  { %2583 = vmatprep.subr.bf16.mxu1 %v3040_v0  ;;  %2587 = vmatprep.mubr.msk.bf16.mxu1 %vm3041_vm0, %v3040_v0  ;;  %vm91_vm1 = vcmask 130048   ;;  %v2858_v3 = vld [vmem:[%s3608_s0] sm:$0xff]   ;;  %v2859_v4 = vld [vmem:[%s3608_s0 + $0x8] sm:$0xff]   ;;  %v3042_v6 = vmov 0   ;;  %s3043_s5 = smov 32   ;;  %vm181_vm2 = vcmask 261120  }
  0x1d   :  { %2573 = vmatprep.subr.bf16.mxu0 %v2856_v1  ;;  %2584 = vmatpush3.bf16.msra.mxu1 %v3083_v2  ;;  %v3094_v5 = vld [vmem:[#allocation2 + $0x8] sm:$0xff]   ;;  %v3111_v8 = vshrl.u32 %v61_v7, 7  ;;  %v3117_v10 = vld [vmem:[%s3611_s3] sm:$0xff]  ;;  %v2861_v49 = vld [vmem:[%s3608_s0 + $0x10] sm:$0xff]  }
  0x1e   :  { %2574 = vmatpush3.bf16.msra.mxu0 %v2856_v1  ;;  %2575 = vmatprep.mubr.msk.bf16.mxu0 %vm91_vm1, %v2858_v3  ;;  %v2862_v50 = vld [vmem:[%s3608_s0 + $0x18] sm:$0xff]  }
  0x1f   :  { %2585 = vmatprep.subr.bf16.mxu1 %v3040_v0  ;;  %2599 = vmatprep.subr.bf16.mxu0 %v3040_v0  ;;  %v63_v9 = vsub.s32 0, %v3111_v8 }
  0x21   :  { %2576 = vmatmul.mubr.msk.bf16.vlgmr.msra.gmra.mxu0 %vm91_vm1, %v2859_v4  ;;  %2586 = vmatpush3.bf16.msra.mxu1 %v3094_v5  ;;  %v3122_v12 = vrot.slane %v3117_v10, %v63_v9 }
  0x22   :  { %2600 = vmatpush3.bf16.msra.mxu0 %v3083_v2  ;;  %2591 = vmatprep.subr.bf16.mxu1 %v3040_v0 }
  0x23   :  { %2601 = vmatprep.subr.bf16.mxu0 %v3040_v0  ;;  %2579 = vmatprep.mubr.msk.bf16.mxu0 %vm91_vm1, %v2861_v49 }
  0x24   :  { %2588 = vmatmul.mubr.bf16.vlgmr.msra.gmra.mxu1 %v3042_v6 }
  0x25   :  { %2592 = vmatpush3.bf16.msra.mxu1 %v3083_v2  ;;  %2595 = vmatprep.mubr.msk.bf16.mxu1 %vm3041_vm0, %v3040_v0 }
  0x26   :  { %2593 = vmatprep.subr.bf16.mxu1 %v3040_v0  ;;  %2602 = vmatpush3.bf16.msra.mxu0 %v3094_v5 }
  0x27   :  { %2615 = vmatprep.subr.bf16.mxu0 %v3040_v0 }
  0x29   :  { %2594 = vmatpush3.bf16.msra.mxu1 %v3094_v5  ;;  %2580 = vmatmul.mubr.msk.bf16.gmra.mxu0 %vm91_vm1, %v2862_v50 }
  0x2a   :  { %2607 = vmatprep.subr.bf16.mxu1 %v3040_v0  ;;  %2603 = vmatprep.mubr.msk.bf16.mxu0 %vm3041_vm0, %v3040_v0 }
  0xe1   :  { %v3119_v11 = vpop.f32.mrf.mxu0 }
  0xe2   :  { %v147_v60 = vadd.f32 %v3119_v11, %v3122_v12 }
  0xe3   :  { %v138_v13 = vpop.f32.mrf.mxu0 }
  0xe4   :  { %v139_v14 = vadd.f32 %v138_v13, %v3122_v12  ;;  %v219_v15 = vpop.f32.mrf.mxu1 }
  0xe5   :  { %v3140_v33 = vpop.f32.mrf.mxu0 }
  0xe6   :  { %v225_v16 = vadd.f32 %v219_v15, %v139_v14  ;;  %v2589_v17 = vpop.f32.mrf.mxu1 }
  0xe7   :  { %v141_v34 = vpop.f32.mrf.mxu0 }
  0xe8   :  { %2889 = vtanh.f32 %v225_v16  ;;  %v222_v18 = vpop.f32.mrf.mxu1  ;;  %v142_v35 = vadd.f32 %v141_v34, %v3122_v12 }
  0xe9   :  { %v3168_v56 = vpop.f32.mrf.mxu0 }
  0xea   :  { %v2590_v19 = vpop.f32.mrf.mxu1 }
  0xeb   :  { %v3170_v57 = vpop.f32.mrf.mxu0 }
  0xed   :  { %v3172_v58 = vpop.f32.mrf.mxu0 }
  0xef   :  { %v3174_v59 = vpop.f32.mrf.mxu0 }
  0xf5   :  { %v2890_v20 = vpop.eup %2889 }
  0xf6   :  { %231 = vrot.lane.b32.xlu0 %v2890_v20, %s3037_s18  ;;  %v227_v21 = vmul.f32 0.5, %v2890_v20 }
  0xf8   :  { %v228_v22 = vadd.f32 0.5, %v227_v21 }
  0xfa   :  { %v229_v25 = vmul.f32 0.0, %v228_v22 }
 0x168   :  { %v232_v23 = vpop.permute.xlu0 %231 }
 0x169   :  { %v234_v24 = vmul.f32 %v232_v23, %v228_v22 }
 0x16b   :  { %236 = vrot.lane.b32.xlu0 %v234_v24, %s3043_s5 }
 0x1dd   :  { %v237_v26 = vpop.permute.xlu0 %236 }
 0x1de   :  { %v239_v27 = vadd.f32 %v237_v26, %v229_v25 }
 0x1e0   :  { %2891 = vtanh.f32 %v239_v27 }
 0x1ed   :  { %v2892_v28 = vpop.eup %2891 }
 0x1ee   :  { %242 = vrot.lane.b32.xlu1 %v2892_v28, %s3037_s18 }
 0x260   :  { %v243_v29 = vpop.permute.xlu1 %242 }
 0x261   :  { %v3128_v30 = vmul.f32 %v243_v29, %v228_v22  ;;  %v150_v22 = vadd.f32 %v3140_v33, %v3122_v12 }
 0x263   :  { %v246_v31 = vpack.c.bf16 %v3128_v30, %v3128_v30 }
 0x265   :  { %248 = vrot.lane.b32.xlu1 %v246_v31, %s3043_s5 }
 0x2d7   :  { %v249_v32 = vpop.permute.xlu1 %248 }
 0x2d8   :  { %2596 = vmatmul.mubr.msk.bf16.vlgmr.msra.gmra.mxu1 %vm181_vm2, %v249_v32 }
 0x2d9   :  { %2608 = vmatpush3.bf16.msra.mxu1 %v3083_v2  ;;  %2611 = vmatprep.mubr.msk.bf16.mxu1 %vm3041_vm0, %v3040_v0 }
 0x2da   :  { %2609 = vmatprep.subr.bf16.mxu1 %v3040_v0 }
 0x2dd   :  { %2610 = vmatpush3.bf16.msra.mxu1 %v3094_v5 }
 0x2de   :  { %2623 = vmatprep.subr.bf16.mxu1 %v3040_v0 }
 0x398   :  { %v287_v36 = vpop.f32.mrf.mxu1 }
 0x399   :  { %v293_v37 = vadd.f32 %v287_v36, %v142_v35 }
 0x39a   :  { %v2597_v38 = vpop.f32.mrf.mxu1 }
 0x39b   :  { %2893 = vtanh.f32 %v293_v37 }
 0x39c   :  { %v290_v39 = vpop.f32.mrf.mxu1 }
 0x39e   :  { %v2598_v40 = vpop.f32.mrf.mxu1 }
 0x3a8   :  { %v2894_v41 = vpop.eup %2893 }
 0x3a9   :  { %299 = vrot.lane.b32.xlu0 %v2894_v41, %s3037_s18  ;;  %v295_v42 = vmul.f32 0.5, %v2894_v41 }
 0x3ab   :  { %v296_v43 = vadd.f32 0.5, %v295_v42  ;;  %v155_v42 = vadd.f32 %v3170_v57, %v3122_v12 }
 0x3ad   :  { %v297_v46 = vmul.f32 %v296_v43, %v239_v27 }
 0x41b   :  { %v300_v44 = vpop.permute.xlu0 %299 }
 0x41c   :  { %v302_v45 = vmul.f32 %v300_v44, %v296_v43 }
 0x41e   :  { %304 = vrot.lane.b32.xlu1 %v302_v45, %s3043_s5 }
 0x490   :  { %v305_v47 = vpop.permute.xlu1 %304 }
 0x491   :  { %v307_v48 = vadd.f32 %v305_v47, %v297_v46 }
 0x493   :  { %2895 = vtanh.f32 %v307_v48 }
 0x4a0   :  { %v2896_v51 = vpop.eup %2895 }
 0x4a1   :  { %310 = vrot.lane.b32.xlu0 %v2896_v51, %s3037_s18 }
 0x513   :  { %v311_v52 = vpop.permute.xlu0 %310 }
 0x514   :  { %v3156_v53 = vmul.f32 %v311_v52, %v296_v43 }
 0x516   :  { %v314_v54 = vpack.c.bf16 %v3156_v53, %v3156_v53 }
 0x518   :  { %316 = vrot.lane.b32.xlu1 %v314_v54, %s3043_s5 }
 0x58a   :  { %v317_v55 = vpop.permute.xlu1 %316 }
 0x58b   :  { %2604 = vmatmul.mubr.msk.bf16.vlgmr.msra.gmra.mxu0 %vm181_vm2, %v317_v55 }
 0x58c   :  { %2616 = vmatpush3.bf16.msra.mxu0 %v3083_v2  ;;  %2619 = vmatprep.mubr.msk.bf16.mxu0 %vm3041_vm0, %v3040_v0 }
 0x58d   :  { %2617 = vmatprep.subr.bf16.mxu0 %v3040_v0 }
 0x590   :  { %2618 = vmatpush3.bf16.msra.mxu0 %v3094_v5 }
 0x591   :  { %2631 = vmatprep.subr.bf16.mxu0 %v3040_v0 }
 0x64b   :  { %v355_v61 = vpop.f32.mrf.mxu0 }
 0x64c   :  { %v361_v62 = vadd.f32 %v355_v61, %v147_v60 }
 0x64d   :  { %v2605_v63 = vpop.f32.mrf.mxu0 }
 0x64e   :  { %2897 = vtanh.f32 %v361_v62 }
 0x64f   :  { %v358_v1 = vpop.f32.mrf.mxu0 }
 0x651   :  { %v2606_v3 = vpop.f32.mrf.mxu0 }
 0x652   :  { %v158_v3 = vadd.f32 %v3174_v59, %v3122_v12 }
 0x65b   :  { %v2898_v4 = vpop.eup %2897 }
 0x65c   :  { %367 = vrot.lane.b32.xlu0 %v2898_v4, %s3037_s18  ;;  %v363_v7 = vmul.f32 0.5, %v2898_v4 }
 0x65e   :  { %v364_v9 = vadd.f32 0.5, %v363_v7 }
 0x660   :  { %v365_v15 = vmul.f32 %v364_v9, %v307_v48 }
 0x6ce   :  { %v368_v13 = vpop.permute.xlu0 %367 }
 0x6cf   :  { %v370_v14 = vmul.f32 %v368_v13, %v364_v9 }
 0x6d1   :  { %372 = vrot.lane.b32.xlu1 %v370_v14, %s3043_s5 }
 0x743   :  { %v373_v16 = vpop.permute.xlu1 %372 }
 0x744   :  { %v375_v17 = vadd.f32 %v373_v16, %v365_v15 }
 0x746   :  { %2899 = vtanh.f32 %v375_v17 }
 0x753   :  { %v2900_v11 = vpop.eup %2899 }
 0x754   :  { %378 = vrot.lane.b32.xlu0 %v2900_v11, %s3037_s18 }
 0x7c6   :  { %v379_v18 = vpop.permute.xlu0 %378 }
 0x7c7   :  { %v3181_v19 = vmul.f32 %v379_v18, %v364_v9 }
 0x7c9   :  { %v382_v20 = vpack.c.bf16 %v3181_v19, %v3181_v19 }
 0x7cb   :  { %384 = vrot.lane.b32.xlu1 %v382_v20, %s3043_s5 }
 0x83d   :  { %v385_v21 = vpop.permute.xlu1 %384 }
 0x83e   :  { %2612 = vmatmul.mubr.msk.bf16.vlgmr.msra.gmra.mxu1 %vm181_vm2, %v385_v21 }
 0x83f   :  { %2624 = vmatpush3.bf16.msra.mxu1 %v3083_v2  ;;  %2627 = vmatprep.mubr.msk.bf16.mxu1 %vm3041_vm0, %v3040_v0 }
 0x840   :  { %2625 = vmatprep.subr.bf16.mxu1 %v3040_v0 }
 0x843   :  { %2626 = vmatpush3.bf16.msra.mxu1 %v3094_v5 }
 0x844   :  { %2639 = vmatprep.subr.bf16.mxu1 %v3040_v0 }
 0x8fe   :  { %v423_v23 = vpop.f32.mrf.mxu1 }
 0x8ff   :  { %v429_v24 = vadd.f32 %v423_v23, %v150_v22 }
 0x900   :  { %v2613_v25 = vpop.f32.mrf.mxu1 }
 0x901   :  { %2901 = vtanh.f32 %v429_v24  ;;  %v163_v25 = vadd.f32 %v3168_v56, %v3122_v12  ;;  %v2863_v56 = vld [vmem:[#allocation2 + $0x20] sm:$0xff]  }
 0x902   :  { %v426_v26 = vpop.f32.mrf.mxu1 }
 0x904   :  { %v2614_v27 = vpop.f32.mrf.mxu1 }
 0x90e   :  { %v2902_v28 = vpop.eup %2901 }
 0x90f   :  { %435 = vrot.lane.b32.xlu0 %v2902_v28, %s3037_s18  ;;  %v431_v29 = vmul.f32 0.5, %v2902_v28 }
 0x911   :  { %v432_v31 = vadd.f32 0.5, %v431_v29 }
 0x913   :  { %v433_v35 = vmul.f32 %v432_v31, %v375_v17 }
 0x981   :  { %v436_v32 = vpop.permute.xlu0 %435 }
 0x982   :  { %v438_v34 = vmul.f32 %v436_v32, %v432_v31 }
 0x984   :  { %440 = vrot.lane.b32.xlu1 %v438_v34, %s3043_s5 }
 0x9f6   :  { %v441_v36 = vpop.permute.xlu1 %440 }
 0x9f7   :  { %v443_v37 = vadd.f32 %v441_v36, %v433_v35 }
 0x9f9   :  { %2903 = vtanh.f32 %v443_v37 }
 0xa06   :  { %v2904_v33 = vpop.eup %2903 }
 0xa07   :  { %446 = vrot.lane.b32.xlu0 %v2904_v33, %s3037_s18 }
 0xa79   :  { %v447_v38 = vpop.permute.xlu0 %446 }
 0xa7a   :  { %v3198_v39 = vmul.f32 %v447_v38, %v432_v31 }
 0xa7c   :  { %v450_v40 = vpack.c.bf16 %v3198_v39, %v3198_v39 }
 0xa7e   :  { %452 = vrot.lane.b32.xlu1 %v450_v40, %s3043_s5 }
 0xaf0   :  { %v453_v41 = vpop.permute.xlu1 %452 }
 0xaf1   :  { %2620 = vmatmul.mubr.msk.bf16.vlgmr.msra.gmra.mxu0 %vm181_vm2, %v453_v41  ;;  %v2864_v41 = vld [vmem:[#allocation2 + $0x18] sm:$0xff]  }
 0xaf2   :  { %2632 = vmatpush3.bf16.msra.mxu0 %v3083_v2  ;;  %2635 = vmatprep.mubr.msk.bf16.mxu0 %vm3041_vm0, %v3040_v0 }
 0xaf3   :  { %2633 = vmatprep.subr.bf16.mxu0 %v3040_v0 }
 0xaf6   :  { %2634 = vmatpush3.bf16.msra.mxu0 %v3094_v5 }
 0xaf7   :  { %2647 = vmatprep.subr.bf16.mxu0 %v2863_v56 }
 0xbb1   :  { %v491_v43 = vpop.f32.mrf.mxu0 }
 0xbb2   :  { %v497_v44 = vadd.f32 %v491_v43, %v155_v42  ;;  %v722_v43 = vpack.c.bf16 %v3156_v53, %v3128_v30  ;;  %v3258_v30 = vld [vmem:[#allocation2 + $0x30] sm:$0xff]  }
 0xbb3   :  { %v2621_v45 = vpop.f32.mrf.mxu0 }
 0xbb4   :  { %2905 = vtanh.f32 %v497_v44 }
 0xbb5   :  { %v494_v46 = vpop.f32.mrf.mxu0 }
 0xbb7   :  { %v2622_v47 = vpop.f32.mrf.mxu0 }
 0xbc1   :  { %v2906_v48 = vpop.eup %2905 }
 0xbc2   :  { %503 = vrot.lane.b32.xlu0 %v2906_v48, %s3037_s18  ;;  %v499_v49 = vmul.f32 0.5, %v2906_v48  ;;  %v723_v48 = vpack.c.bf16 %v3198_v39, %v3181_v19  ;;  %v166_v19 = vadd.f32 %v3172_v58, %v3122_v12 }
 0xbc4   :  { %v500_v50 = vadd.f32 0.5, %v499_v49  ;;  %v3262_v49 = vld [vmem:[#allocation2 + $0x28] sm:$0xff]  }
 0xbc6   :  { %v501_v54 = vmul.f32 %v500_v50, %v443_v37 }
 0xc34   :  { %v504_v51 = vpop.permute.xlu0 %503 }
 0xc35   :  { %v506_v52 = vmul.f32 %v504_v51, %v500_v50 }
 0xc37   :  { %508 = vrot.lane.b32.xlu1 %v506_v52, %s3043_s5  ;;  %v736_v52 = vsub.s32 1, %v3111_v8 }
 0xca9   :  { %v509_v55 = vpop.permute.xlu1 %508 }
 0xcaa   :  { %v511_v60 = vadd.f32 %v509_v55, %v501_v54 }
 0xcac   :  { %2907 = vtanh.f32 %v511_v60 }
 0xcb9   :  { %v2908_v57 = vpop.eup %2907 }
 0xcba   :  { %514 = vrot.lane.b32.xlu0 %v2908_v57, %s3037_s18  ;;  %v3287_v57 = vrot.slane %v3117_v10, %v736_v52 }
 0xd2c   :  { %v515_v61 = vpop.permute.xlu0 %514 }
 0xd2d   :  { %v3214_v62 = vmul.f32 %v515_v61, %v500_v50 }
 0xd2f   :  { %v518_v63 = vpack.c.bf16 %v3214_v62, %v3214_v62 }
 0xd31   :  { %520 = vrot.lane.b32.xlu1 %v518_v63, %s3043_s5 }
 0xda3   :  { %v521_v1 = vpop.permute.xlu1 %520 }
 0xda4   :  { %2628 = vmatmul.mubr.msk.bf16.vlgmr.msra.gmra.mxu1 %vm181_vm2, %v521_v1 }
 0xda5   :  { %2640 = vmatpush3.bf16.msra.mxu1 %v3083_v2  ;;  %2643 = vmatprep.mubr.msk.bf16.mxu1 %vm3041_vm0, %v3040_v0 }
 0xda6   :  { %2641 = vmatprep.subr.bf16.mxu1 %v3040_v0 }
 0xda9   :  { %2642 = vmatpush3.bf16.msra.mxu1 %v3094_v5 }
 0xdaa   :  { %2659 = vmatprep.subr.bf16.mxu1 %v3040_v0 }
 0xe64   :  { %v559_v4 = vpop.f32.mrf.mxu1 }
 0xe65   :  { %v565_v7 = vadd.f32 %v559_v4, %v158_v3 }
 0xe66   :  { %v2629_v9 = vpop.f32.mrf.mxu1 }
 0xe67   :  { %2909 = vtanh.f32 %v565_v7 }
 0xe68   :  { %v562_v13 = vpop.f32.mrf.mxu1 }
 0xe6a   :  { %v2630_v14 = vpop.f32.mrf.mxu1 }
 0xe74   :  { %v2910_v15 = vpop.eup %2909 }
 0xe75   :  { %571 = vrot.lane.b32.xlu0 %v2910_v15, %s3037_s18  ;;  %v567_v2 = vmul.f32 0.5, %v2910_v15 }
 0xe77   :  { %v568_v16 = vadd.f32 0.5, %v567_v2 }
 0xe79   :  { %v569_v5 = vmul.f32 %v568_v16, %v511_v60 }
 0xee7   :  { %v572_v17 = vpop.permute.xlu0 %571 }
 0xee8   :  { %v574_v11 = vmul.f32 %v572_v17, %v568_v16 }
 0xeea   :  { %576 = vrot.lane.b32.xlu1 %v574_v11, %s3043_s5 }
 0xf5c   :  { %v577_v18 = vpop.permute.xlu1 %576 }
 0xf5d   :  { %v579_v20 = vadd.f32 %v577_v18, %v569_v5 }
 0xf5f   :  { %2911 = vtanh.f32 %v579_v20 }
 0xf6c   :  { %v2912_v59 = vpop.eup %2911 }
 0xf6d   :  { %582 = vrot.lane.b32.xlu0 %v2912_v59, %s3037_s18 }
 0xfdf   :  { %v583_v21 = vpop.permute.xlu0 %582 }
 0xfe0   :  { %v3231_v22 = vmul.f32 %v583_v21, %v568_v16 }
 0xfe2   :  { %v586_v23 = vpack.c.bf16 %v3231_v22, %v3231_v22 }
 0xfe4   :  { %588 = vrot.lane.b32.xlu1 %v586_v23, %s3043_s5 }
0x1056   :  { %v589_v24 = vpop.permute.xlu1 %588 }
0x1057   :  { %2636 = vmatmul.mubr.msk.bf16.vlgmr.msra.gmra.mxu0 %vm181_vm2, %v589_v24 }
0x1058   :  { %2648 = vmatpush3.bf16.msra.mxu0 %v2863_v56 }
0x1059   :  { %2649 = vmatprep.subr.bf16.mxu0 %v2864_v41 }
0x105c   :  { %2650 = vmatpush3.bf16.msra.mxu0 %v2864_v41 }
0x105d   :  { %2675 = vmatprep.subr.bf16.mxu0 %v3040_v0 }
0x1117   :  { %v627_v26 = vpop.f32.mrf.mxu0 }
0x1118   :  { %v633_v27 = vadd.f32 %v627_v26, %v163_v25 }
0x1119   :  { %v2637_v28 = vpop.f32.mrf.mxu0 }
0x111a   :  { %2913 = vtanh.f32 %v633_v27 }
0x111b   :  { %v630_v29 = vpop.f32.mrf.mxu0 }
0x111d   :  { %v2638_v31 = vpop.f32.mrf.mxu0 }
0x1127   :  { %v2914_v32 = vpop.eup %2913 }
0x1128   :  { %639 = vrot.lane.b32.xlu0 %v2914_v32, %s3037_s18  ;;  %v635_v34 = vmul.f32 0.5, %v2914_v32  ;;  %v724_v32 = vpack.c.bf16 %v3231_v22, %v3214_v62 }
0x112a   :  { %v636_v35 = vadd.f32 0.5, %v635_v34 }
0x112c   :  { %v637_v33 = vmul.f32 %v636_v35, %v579_v20 }
0x119a   :  { %v640_v36 = vpop.permute.xlu0 %639 }
0x119b   :  { %v642_v37 = vmul.f32 %v640_v36, %v636_v35 }
0x119d   :  { %644 = vrot.lane.b32.xlu1 %v642_v37, %s3043_s5 }
0x120f   :  { %v645_v38 = vpop.permute.xlu1 %644 }
0x1210   :  { %v3241_v40 = vadd.f32 %v645_v38, %v637_v33 }
0x1212   :  { %2915 = vtanh.f32 %v3241_v40 }
0x121f   :  { %v2916_v42 = vpop.eup %2915 }
0x1220   :  { %650 = vrot.lane.b32.xlu0 %v2916_v42, %s3037_s18 }
0x1224   :  { %742 = vrot.lane.b32.xlu0 %v722_v43, %s3043_s5 }
0x1292   :  { %v651_v44 = vpop.permute.xlu0 %650 }
0x1293   :  { %v3249_v45 = vmul.f32 %v651_v44, %v636_v35 }
0x1295   :  { %v654_v46 = vpack.c.bf16 %v3249_v45, %v3249_v45 }
0x1296   :  { %v743_v47 = vpop.permute.xlu0 %742 }
0x1297   :  { %656 = vrot.lane.b32.xlu1 %v654_v46, %s3043_s5  ;;  %2651 = vmatprep.mubr.msk.bf16.mxu0 %vm181_vm2, %v743_v47 }
0x129b   :  { %744 = vrot.lane.b32.xlu1 %v723_v48, %s3043_s5 }
0x1309   :  { %v657_v53 = vpop.permute.xlu1 %656 }
0x130a   :  { %2644 = vmatmul.mubr.msk.bf16.vlgmr.msra.gmra.mxu1 %vm181_vm2, %v657_v53 }
0x130b   :  { %2660 = vmatpush3.bf16.msra.mxu1 %v3258_v30  ;;  %2663 = vmatprep.mubr.msk.bf16.mxu1 %vm3041_vm0, %v3040_v0 }
0x130c   :  { %2661 = vmatprep.subr.bf16.mxu1 %v3040_v0 }
0x130d   :  { %v745_v50 = vpop.permute.xlu1 %744 }
0x130e   :  { %2652 = vmatmul.mubr.msk.bf16.vlgmr.msra.gmra.mxu0 %vm181_vm2, %v745_v50 }
0x130f   :  { %2662 = vmatpush3.bf16.msra.mxu1 %v3262_v49  ;;  %2676 = vmatpush3.bf16.msra.mxu0 %v3258_v30 }
0x1310   :  { %2667 = vmatprep.subr.bf16.mxu1 %v3040_v0  ;;  %2677 = vmatprep.subr.bf16.mxu0 %v3040_v0 }
0x1312   :  { %2664 = vmatmul.mubr.bf16.vlgmr.msra.gmra.mxu1 %v3042_v6 }
0x1313   :  { %2668 = vmatpush3.bf16.msra.mxu1 %v3258_v30  ;;  %2671 = vmatprep.mubr.msk.bf16.mxu1 %vm3041_vm0, %v3040_v0 }
0x1314   :  { %2669 = vmatprep.subr.bf16.mxu1 %v3040_v0  ;;  %2678 = vmatpush3.bf16.msra.mxu0 %v3262_v49 }
0x1315   :  { %2691 = vmatprep.subr.bf16.mxu0 %v3040_v0 }
0x1317   :  { %2670 = vmatpush3.bf16.msra.mxu1 %v3262_v49 }
0x1318   :  { %2683 = vmatprep.subr.bf16.mxu1 %v3040_v0 }
0x13ca   :  { %v695_v39 = vpop.f32.mrf.mxu1 }
0x13cb   :  { %v701_v51 = vadd.f32 %v695_v39, %v166_v19 }
0x13cc   :  { %v2645_v54 = vpop.f32.mrf.mxu1 }
0x13ce   :  { %v698_v55 = vpop.f32.mrf.mxu1  ;;  %v3284_v60 = vpop.f32.mrf.mxu0 }
0x13d0   :  { %v2646_v61 = vpop.f32.mrf.mxu1  ;;  %v808_v63 = vpop.f32.mrf.mxu0 }
0x13d1   :  { %v809_v1 = vadd.f32 %v808_v63, %v3287_v57 }
0x13d2   :  { %v885_v3 = vpop.f32.mrf.mxu1  ;;  %v3313_v36 = vpop.f32.mrf.mxu0 }
0x13d3   :  { %v891_v4 = vadd.f32 %v885_v3, %v809_v1 }
0x13d4   :  { %v2665_v7 = vpop.f32.mrf.mxu1  ;;  %v811_v37 = vpop.f32.mrf.mxu0 }
0x13d5   :  { %2917 = vtanh.f32 %v891_v4  ;;  %v812_v33 = vadd.f32 %v811_v37, %v3287_v57  ;;  %v817_v4 = vadd.f32 %v3284_v60, %v3287_v57 }
0x13d6   :  { %v888_v12 = vpop.f32.mrf.mxu1 }
0x13d8   :  { %v2666_v58 = vpop.f32.mrf.mxu1 }
0x13e2   :  { %v2918_v9 = vpop.eup %2917 }
0x13e3   :  { %897 = vrot.lane.b32.xlu0 %v2918_v9, %s3037_s18  ;;  %v893_v13 = vmul.f32 0.5, %v2918_v9 }
0x13e5   :  { %v894_v14 = vadd.f32 0.5, %v893_v13 }
0x13e7   :  { %v895_v10 = vmul.f32 0.0, %v894_v14 }
0x1455   :  { %v898_v15 = vpop.permute.xlu0 %897 }
0x1456   :  { %v900_v2 = vmul.f32 %v898_v15, %v894_v14 }
0x1458   :  { %902 = vrot.lane.b32.xlu1 %v900_v2, %s3043_s5 }
0x14ca   :  { %v903_v16 = vpop.permute.xlu1 %902 }
0x14cb   :  { %v905_v17 = vadd.f32 %v903_v16, %v895_v10 }
0x14cd   :  { %2919 = vtanh.f32 %v905_v17 }
0x14ce   :  { %2921 = vtanh.f32 %v701_v51 }
0x14da   :  { %v2920_v11 = vpop.eup %2919 }
0x14db   :  { %908 = vrot.lane.b32.xlu0 %v2920_v11, %s3037_s18  ;;  %v2922_v5 = vpop.eup %2921 }
0x14dc   :  { %v703_v18 = vmul.f32 0.5, %v2922_v5 }
0x14de   :  { %v704_v23 = vadd.f32 0.5, %v703_v18 }
0x14df   :  { %707 = vrot.lane.b32.xlu0 %v2922_v5, %s3037_s18 }
0x14e0   :  { %v705_v27 = vmul.f32 %v704_v23, %v3241_v40 }
0x154d   :  { %v909_v20 = vpop.permute.xlu0 %908 }
0x154e   :  { %v3294_v59 = vmul.f32 %v909_v20, %v894_v14 }
0x1550   :  { %v912_v21 = vpack.c.bf16 %v3294_v59, %v3294_v59 }
0x1551   :  { %v708_v24 = vpop.permute.xlu0 %707 }
0x1552   :  { %v710_v25 = vmul.f32 %v708_v24, %v704_v23  ;;  %914 = vrot.lane.b32.xlu1 %v912_v21, %s3043_s5  ;;  %v820_v24 = vadd.f32 %v3313_v36, %v3287_v57 }
0x1554   :  { %712 = vrot.lane.b32.xlu0 %v710_v25, %s3043_s5 }
0x15c4   :  { %v915_v26 = vpop.permute.xlu1 %914 }
0x15c5   :  { %2672 = vmatmul.mubr.msk.bf16.vlgmr.msra.gmra.mxu1 %vm181_vm2, %v915_v26 }
0x15c6   :  { %v713_v28 = vpop.permute.xlu0 %712  ;;  %2684 = vmatpush3.bf16.msra.mxu1 %v3258_v30  ;;  %2687 = vmatprep.mubr.msk.bf16.mxu1 %vm3041_vm0, %v3040_v0 }
0x15c7   :  { %v715_v29 = vadd.f32 %v713_v28, %v705_v27  ;;  %2685 = vmatprep.subr.bf16.mxu1 %v3040_v0 }
0x15c9   :  { %2923 = vtanh.f32 %v715_v29 }
0x15ca   :  { %2686 = vmatpush3.bf16.msra.mxu1 %v3262_v49 }
0x15cb   :  { %2699 = vmatprep.subr.bf16.mxu1 %v3040_v0 }
0x15d6   :  { %v2924_v31 = vpop.eup %2923 }
0x15d7   :  { %718 = vrot.lane.b32.xlu0 %v2924_v31, %s3037_s18 }
0x15db   :  { %746 = vrot.lane.b32.xlu0 %v724_v32, %s3043_s5 }
0x1649   :  { %v719_v34 = vpop.permute.xlu0 %718 }
0x164a   :  { %v721_v50 = vmul.f32 %v719_v34, %v704_v23 }
0x164c   :  { %v725_v39 = vpack.c.bf16 %v721_v50, %v3249_v45 }
0x164d   :  { %v747_v35 = vpop.permute.xlu0 %746 }
0x164e   :  { %2655 = vmatprep.mubr.msk.bf16.mxu0 %vm181_vm2, %v747_v35 }
0x1685   :  { %v953_v38 = vpop.f32.mrf.mxu1 }
0x1686   :  { %v959_v40 = vadd.f32 %v953_v38, %v812_v33 }
0x1687   :  { %v2673_v56 = vpop.f32.mrf.mxu1 }
0x1688   :  { %2925 = vtanh.f32 %v959_v40 }
0x1689   :  { %v956_v41 = vpop.f32.mrf.mxu1 }
0x168b   :  { %v2674_v42 = vpop.f32.mrf.mxu1 }
0x1695   :  { %v2926_v43 = vpop.eup %2925 }
0x1696   :  { %965 = vrot.lane.b32.xlu1 %v2926_v43, %s3037_s18  ;;  %v961_v62 = vmul.f32 0.5, %v2926_v43 }
0x1698   :  { %v962_v22 = vadd.f32 0.5, %v961_v62 }
0x169a   :  { %v963_v47 = vmul.f32 %v962_v22, %v905_v17 }
0x1708   :  { %v966_v44 = vpop.permute.xlu1 %965 }
0x1709   :  { %v968_v46 = vmul.f32 %v966_v44, %v962_v22 }
0x170b   :  { %970 = vrot.lane.b32.xlu1 %v968_v46, %s3043_s5 }
0x177d   :  { %v971_v48 = vpop.permute.xlu1 %970 }
0x177e   :  { %v973_v53 = vadd.f32 %v971_v48, %v963_v47 }
0x1780   :  { %2927 = vtanh.f32 %v973_v53 }
0x178d   :  { %v2928_v19 = vpop.eup %2927 }
0x178e   :  { %976 = vrot.lane.b32.xlu1 %v2928_v19, %s3037_s18 }
0x1792   :  { %748 = vrot.lane.b32.xlu1 %v725_v39, %s3043_s5 }
0x1800   :  { %v977_v51 = vpop.permute.xlu1 %976 }
0x1801   :  { %v3321_v52 = vmul.f32 %v977_v51, %v962_v22 }
0x1803   :  { %v980_v54 = vpack.c.bf16 %v3321_v52, %v3321_v52 }
0x1804   :  { %v749_v55 = vpop.permute.xlu1 %748 }
0x1805   :  { %982 = vrot.lane.b32.xlu0 %v980_v54, %s3043_s5  ;;  %2656 = vmatmul.mubr.msk.bf16.gmra.mxu0 %vm181_vm2, %v749_v55 }
0x1806   :  { %2679 = vmatprep.mubr.msk.bf16.mxu0 %vm3041_vm0, %v3040_v0 }
0x1877   :  { %v983_v61 = vpop.permute.xlu0 %982 }
0x1878   :  { %2680 = vmatmul.mubr.msk.bf16.vlgmr.msra.gmra.mxu0 %vm181_vm2, %v983_v61 }
0x1879   :  { %2692 = vmatpush3.bf16.msra.mxu0 %v3258_v30  ;;  %2695 = vmatprep.mubr.msk.bf16.mxu0 %vm3041_vm0, %v3040_v0 }
0x187a   :  { %2693 = vmatprep.subr.bf16.mxu0 %v3040_v0 }
0x187d   :  { %2694 = vmatpush3.bf16.msra.mxu0 %v3262_v49 }
0x187e   :  { %2707 = vmatprep.subr.bf16.mxu0 %v3040_v0 }
0x18c5   :  { %v3336_v45 = vpop.f32.mrf.mxu0 }
0x18c7   :  { %v3338_v63 = vpop.f32.mrf.mxu0 }
0x18c8   :  { %v825_v62 = vadd.f32 %v3338_v63, %v3287_v57 }
0x18c9   :  { %v3340_v1 = vpop.f32.mrf.mxu0 }
0x18cb   :  { %v3342_v3 = vpop.f32.mrf.mxu0 }
0x1938   :  { %v1021_v7 = vpop.f32.mrf.mxu0 }
0x1939   :  { %v1027_v12 = vadd.f32 %v1021_v7, %v817_v4 }
0x193a   :  { %v2681_v58 = vpop.f32.mrf.mxu0 }
0x193b   :  { %2929 = vtanh.f32 %v1027_v12 }
0x193c   :  { %v1024_v9 = vpop.f32.mrf.mxu0 }
0x193d   :  { %v828_v9 = vadd.f32 %v3342_v3, %v3287_v57 }
0x193e   :  { %v2682_v13 = vpop.f32.mrf.mxu0 }
0x1948   :  { %v2930_v14 = vpop.eup %2929 }
0x1949   :  { %1033 = vrot.lane.b32.xlu1 %v2930_v14, %s3037_s18  ;;  %v1029_v15 = vmul.f32 0.5, %v2930_v14 }
0x194b   :  { %v1030_v2 = vadd.f32 0.5, %v1029_v15 }
0x194d   :  { %v1031_v17 = vmul.f32 %v1030_v2, %v973_v53 }
0x19bb   :  { %v1034_v10 = vpop.permute.xlu1 %1033 }
0x19bc   :  { %v1036_v16 = vmul.f32 %v1034_v10, %v1030_v2 }
0x19be   :  { %1038 = vrot.lane.b32.xlu0 %v1036_v16, %s3043_s5 }
0x1a30   :  { %v1039_v11 = vpop.permute.xlu0 %1038 }
0x1a31   :  { %v1041_v5 = vadd.f32 %v1039_v11, %v1031_v17 }
0x1a33   :  { %2931 = vtanh.f32 %v1041_v5 }
0x1a40   :  { %v2932_v60 = vpop.eup %2931 }
0x1a41   :  { %1044 = vrot.lane.b32.xlu1 %v2932_v60, %s3037_s18 }
0x1ab3   :  { %v1045_v18 = vpop.permute.xlu1 %1044 }
0x1ab4   :  { %v3349_v20 = vmul.f32 %v1045_v18, %v1030_v2 }
0x1ab6   :  { %v1048_v21 = vpack.c.bf16 %v3349_v20, %v3349_v20 }
0x1ab8   :  { %1050 = vrot.lane.b32.xlu0 %v1048_v21, %s3043_s5 }
0x1b2a   :  { %v1051_v23 = vpop.permute.xlu0 %1050 }
0x1b2b   :  { %2688 = vmatmul.mubr.msk.bf16.vlgmr.msra.gmra.mxu1 %vm181_vm2, %v1051_v23 }
0x1b2c   :  { %2700 = vmatpush3.bf16.msra.mxu1 %v3258_v30  ;;  %2703 = vmatprep.mubr.msk.bf16.mxu1 %vm3041_vm0, %v3040_v0 }
0x1b2d   :  { %2701 = vmatprep.subr.bf16.mxu1 %v3040_v0 }
0x1b30   :  { %2702 = vmatpush3.bf16.msra.mxu1 %v3262_v49 }
0x1b31   :  { %2715 = vmatprep.subr.bf16.mxu1 %v3040_v0 }
0x1beb   :  { %v1089_v25 = vpop.f32.mrf.mxu1 }
0x1bec   :  { %v1095_v26 = vadd.f32 %v1089_v25, %v820_v24 }
0x1bed   :  { %v2689_v27 = vpop.f32.mrf.mxu1 }
0x1bee   :  { %2933 = vtanh.f32 %v1095_v26  ;;  %v833_v26 = vadd.f32 %v3336_v45, %v3287_v57  ;;  %v2867_v45 = vld [vmem:[#allocation2 + $0x40] sm:$0xff]  }
0x1bef   :  { %v1092_v28 = vpop.f32.mrf.mxu1 }
0x1bf1   :  { %v2690_v29 = vpop.f32.mrf.mxu1 }
0x1bfb   :  { %v2934_v31 = vpop.eup %2933 }
0x1bfc   :  { %1101 = vrot.lane.b32.xlu1 %v2934_v31, %s3037_s18  ;;  %v1097_v32 = vmul.f32 0.5, %v2934_v31 }
0x1bfe   :  { %v1098_v34 = vadd.f32 0.5, %v1097_v32 }
0x1c00   :  { %v1099_v33 = vmul.f32 %v1098_v34, %v1041_v5 }
0x1c6e   :  { %v1102_v35 = vpop.permute.xlu1 %1101 }
0x1c6f   :  { %v1104_v37 = vmul.f32 %v1102_v35, %v1098_v34 }
0x1c71   :  { %1106 = vrot.lane.b32.xlu0 %v1104_v37, %s3043_s5 }
0x1ce3   :  { %v1107_v38 = vpop.permute.xlu0 %1106 }
0x1ce4   :  { %v1109_v40 = vadd.f32 %v1107_v38, %v1099_v33 }
0x1ce6   :  { %2935 = vtanh.f32 %v1109_v40 }
0x1cf3   :  { %v2936_v36 = vpop.eup %2935 }
0x1cf4   :  { %1112 = vrot.lane.b32.xlu1 %v2936_v36, %s3037_s18 }
0x1d66   :  { %v1113_v56 = vpop.permute.xlu1 %1112 }
0x1d67   :  { %v3366_v41 = vmul.f32 %v1113_v56, %v1098_v34 }
0x1d69   :  { %v1116_v42 = vpack.c.bf16 %v3366_v41, %v3366_v41 }
0x1d6b   :  { %1118 = vrot.lane.b32.xlu0 %v1116_v42, %s3043_s5  ;;  %v2868_v42 = vld [vmem:[#allocation2 + $0x38] sm:$0xff]  }
0x1ddd   :  { %v1119_v43 = vpop.permute.xlu0 %1118 }
0x1dde   :  { %2696 = vmatmul.mubr.msk.bf16.vlgmr.msra.gmra.mxu0 %vm181_vm2, %v1119_v43 }
0x1ddf   :  { %2708 = vmatpush3.bf16.msra.mxu0 %v3258_v30  ;;  %2711 = vmatprep.mubr.msk.bf16.mxu0 %vm3041_vm0, %v3040_v0 }
0x1de0   :  { %2709 = vmatprep.subr.bf16.mxu0 %v3040_v0 }
0x1de3   :  { %2710 = vmatpush3.bf16.msra.mxu0 %v3262_v49 }
0x1de4   :  { %2723 = vmatprep.subr.bf16.mxu0 %v2867_v45 }
0x1e9e   :  { %v1157_v22 = vpop.f32.mrf.mxu0 }
0x1e9f   :  { %v1163_v44 = vadd.f32 %v1157_v22, %v825_v62  ;;  %v1388_v62 = vpack.c.bf16 %v3321_v52, %v3294_v59  ;;  %v3426_v59 = vld [vmem:[#allocation2 + $0x50] sm:$0xff]  }
0x1ea0   :  { %v2697_v46 = vpop.f32.mrf.mxu0 }
0x1ea1   :  { %2937 = vtanh.f32 %v1163_v44 }
0x1ea2   :  { %v1160_v47 = vpop.f32.mrf.mxu0 }
0x1ea4   :  { %v2698_v48 = vpop.f32.mrf.mxu0 }
0x1ea5   :  { %v1389_v48 = vpack.c.bf16 %v3366_v41, %v3349_v20  ;;  %v836_v20 = vadd.f32 %v3340_v1, %v3287_v57 }
0x1eae   :  { %v2938_v53 = vpop.eup %2937 }
0x1eaf   :  { %1169 = vrot.lane.b32.xlu1 %v2938_v53, %s3037_s18  ;;  %v1165_v50 = vmul.f32 0.5, %v2938_v53  ;;  %v3430_v53 = vld [vmem:[#allocation2 + $0x48] sm:$0xff]  }
0x1eb1   :  { %v1166_v19 = vadd.f32 0.5, %v1165_v50 }
0x1eb3   :  { %v1167_v54 = vmul.f32 %v1166_v19, %v1109_v40 }
0x1f21   :  { %v1170_v39 = vpop.permute.xlu1 %1169 }
0x1f22   :  { %v1172_v51 = vmul.f32 %v1170_v39, %v1166_v19 }
0x1f24   :  { %1174 = vrot.lane.b32.xlu0 %v1172_v51, %s3043_s5 }
0x1f96   :  { %v1175_v55 = vpop.permute.xlu0 %1174 }
0x1f97   :  { %v1177_v61 = vadd.f32 %v1175_v55, %v1167_v54  ;;  %v3457_v55 = vld [vmem:[%s3611_s3] sm:$0xff]  ;;  %s3044_s3 = smov 96  }
0x1f99   :  { %2939 = vtanh.f32 %v1177_v61 }
0x1fa6   :  { %v2940_v63 = vpop.eup %2939 }
0x1fa7   :  { %1180 = vrot.lane.b32.xlu1 %v2940_v63, %s3037_s18 }
0x2019   :  { %v1181_v4 = vpop.permute.xlu1 %1180 }
0x201a   :  { %v3382_v7 = vmul.f32 %v1181_v4, %v1166_v19  ;;  %v1402_v19 = vsub.s32 2, %v3111_v8 }
0x201c   :  { %v1184_v12 = vpack.c.bf16 %v3382_v7, %v3382_v7 }
0x201e   :  { %1186 = vrot.lane.b32.xlu0 %v1184_v12, %s3043_s5 }
0x2090   :  { %v1187_v58 = vpop.permute.xlu0 %1186 }
0x2091   :  { %2704 = vmatmul.mubr.msk.bf16.vlgmr.msra.gmra.mxu1 %vm181_vm2, %v1187_v58 }
0x2092   :  { %2716 = vmatpush3.bf16.msra.mxu1 %v3258_v30  ;;  %2719 = vmatprep.mubr.msk.bf16.mxu1 %vm3041_vm0, %v3040_v0 }
0x2093   :  { %2717 = vmatprep.subr.bf16.mxu1 %v3040_v0 }
0x2096   :  { %2718 = vmatpush3.bf16.msra.mxu1 %v3262_v49 }
0x2097   :  { %2735 = vmatprep.subr.bf16.mxu1 %v3040_v0 }
0x2151   :  { %v1225_v13 = vpop.f32.mrf.mxu1 }
0x2152   :  { %v1231_v14 = vadd.f32 %v1225_v13, %v828_v9 }
0x2153   :  { %v2705_v15 = vpop.f32.mrf.mxu1 }
0x2154   :  { %2941 = vtanh.f32 %v1231_v14 }
0x2155   :  { %v1228_v2 = vpop.f32.mrf.mxu1 }
0x2157   :  { %v2706_v10 = vpop.f32.mrf.mxu1 }
0x2161   :  { %v2942_v16 = vpop.eup %2941 }
0x2162   :  { %1237 = vrot.lane.b32.xlu1 %v2942_v16, %s3037_s18  ;;  %v1233_v30 = vmul.f32 0.5, %v2942_v16 }
0x2164   :  { %v1234_v17 = vadd.f32 0.5, %v1233_v30 }
0x2166   :  { %v1235_v49 = vmul.f32 %v1234_v17, %v1177_v61  ;;  %v3460_v61 = vrot.slane %v3457_v55, %v1402_v19 }
0x21d4   :  { %v1238_v11 = vpop.permute.xlu1 %1237 }
0x21d5   :  { %v1240_v5 = vmul.f32 %v1238_v11, %v1234_v17 }
0x21d7   :  { %1242 = vrot.lane.b32.xlu0 %v1240_v5, %s3043_s5 }
0x2249   :  { %v1243_v60 = vpop.permute.xlu0 %1242 }
0x224a   :  { %v1245_v18 = vadd.f32 %v1243_v60, %v1235_v49 }
0x224c   :  { %2943 = vtanh.f32 %v1245_v18 }
0x2259   :  { %v2944_v3 = vpop.eup %2943 }
0x225a   :  { %1248 = vrot.lane.b32.xlu1 %v2944_v3, %s3037_s18 }
0x22cc   :  { %v1249_v21 = vpop.permute.xlu1 %1248 }
0x22cd   :  { %v3399_v23 = vmul.f32 %v1249_v21, %v1234_v17 }
0x22cf   :  { %v1252_v24 = vpack.c.bf16 %v3399_v23, %v3399_v23 }
0x22d1   :  { %1254 = vrot.lane.b32.xlu0 %v1252_v24, %s3043_s5 }
0x2343   :  { %v1255_v25 = vpop.permute.xlu0 %1254 }
0x2344   :  { %2712 = vmatmul.mubr.msk.bf16.vlgmr.msra.gmra.mxu0 %vm181_vm2, %v1255_v25 }
0x2345   :  { %2724 = vmatpush3.bf16.msra.mxu0 %v2867_v45 }
0x2346   :  { %2725 = vmatprep.subr.bf16.mxu0 %v2868_v42 }
0x2349   :  { %2726 = vmatpush3.bf16.msra.mxu0 %v2868_v42 }
0x234a   :  { %2751 = vmatprep.subr.bf16.mxu0 %v3040_v0 }
0x2404   :  { %v1293_v27 = vpop.f32.mrf.mxu0 }
0x2405   :  { %v1299_v28 = vadd.f32 %v1293_v27, %v833_v26 }
0x2406   :  { %v2713_v29 = vpop.f32.mrf.mxu0 }
0x2407   :  { %2945 = vtanh.f32 %v1299_v28 }
0x2408   :  { %v1296_v31 = vpop.f32.mrf.mxu0 }
0x240a   :  { %v2714_v32 = vpop.f32.mrf.mxu0 }
0x2414   :  { %v2946_v34 = vpop.eup %2945 }
0x2415   :  { %1305 = vrot.lane.b32.xlu1 %v2946_v34, %s3037_s18  ;;  %v1301_v35 = vmul.f32 0.5, %v2946_v34  ;;  %v1390_v34 = vpack.c.bf16 %v3399_v23, %v3382_v7 }
0x2417   :  { %v1302_v37 = vadd.f32 0.5, %v1301_v35 }
0x2419   :  { %v1303_v40 = vmul.f32 %v1302_v37, %v1245_v18 }
0x2487   :  { %v1306_v33 = vpop.permute.xlu1 %1305 }
0x2488   :  { %v1308_v38 = vmul.f32 %v1306_v33, %v1302_v37 }
0x248a   :  { %1310 = vrot.lane.b32.xlu0 %v1308_v38, %s3043_s5 }
0x24fc   :  { %v1311_v36 = vpop.permute.xlu0 %1310 }
0x24fd   :  { %v3409_v56 = vadd.f32 %v1311_v36, %v1303_v40 }
0x24ff   :  { %2947 = vtanh.f32 %v3409_v56 }
0x250c   :  { %v2948_v43 = vpop.eup %2947 }
0x250d   :  { %1316 = vrot.lane.b32.xlu1 %v2948_v43, %s3037_s18 }
0x2511   :  { %1408 = vrot.lane.b32.xlu1 %v1388_v62, %s3043_s5 }
0x257f   :  { %v1317_v22 = vpop.permute.xlu1 %1316 }
0x2580   :  { %v3417_v44 = vmul.f32 %v1317_v22, %v1302_v37 }
0x2582   :  { %v1320_v46 = vpack.c.bf16 %v3417_v44, %v3417_v44 }
0x2583   :  { %v1409_v47 = vpop.permute.xlu1 %1408 }
0x2584   :  { %1322 = vrot.lane.b32.xlu0 %v1320_v46, %s3043_s5  ;;  %2727 = vmatprep.mubr.msk.bf16.mxu0 %vm181_vm2, %v1409_v47 }
0x2588   :  { %1410 = vrot.lane.b32.xlu0 %v1389_v48, %s3043_s5 }
0x25f6   :  { %v1323_v52 = vpop.permute.xlu0 %1322 }
0x25f7   :  { %2720 = vmatmul.mubr.msk.bf16.vlgmr.msra.gmra.mxu1 %vm181_vm2, %v1323_v52 }
0x25f8   :  { %2736 = vmatpush3.bf16.msra.mxu1 %v3426_v59  ;;  %2739 = vmatprep.mubr.msk.bf16.mxu1 %vm3041_vm0, %v3040_v0 }
0x25f9   :  { %2737 = vmatprep.subr.bf16.mxu1 %v3040_v0 }
0x25fa   :  { %v1411_v50 = vpop.permute.xlu0 %1410 }
0x25fb   :  { %2728 = vmatmul.mubr.msk.bf16.vlgmr.msra.gmra.mxu0 %vm181_vm2, %v1411_v50 }
0x25fc   :  { %2738 = vmatpush3.bf16.msra.mxu1 %v3430_v53  ;;  %2752 = vmatpush3.bf16.msra.mxu0 %v3426_v59 }
0x25fd   :  { %2743 = vmatprep.subr.bf16.mxu1 %v3040_v0  ;;  %2753 = vmatprep.subr.bf16.mxu0 %v3040_v0 }
0x25ff   :  { %2740 = vmatmul.mubr.bf16.vlgmr.msra.gmra.mxu1 %v3042_v6 }
0x2600   :  { %2744 = vmatpush3.bf16.msra.mxu1 %v3426_v59  ;;  %2747 = vmatprep.mubr.msk.bf16.mxu1 %vm3041_vm0, %v3040_v0 }
0x2601   :  { %2745 = vmatprep.subr.bf16.mxu1 %v3040_v0  ;;  %2754 = vmatpush3.bf16.msra.mxu0 %v3430_v53 }
0x2602   :  { %2767 = vmatprep.subr.bf16.mxu0 %v3040_v0 }
0x2604   :  { %2746 = vmatpush3.bf16.msra.mxu1 %v3430_v53 }
0x2605   :  { %2759 = vmatprep.subr.bf16.mxu1 %v3040_v0 }
0x26b7   :  { %v1361_v41 = vpop.f32.mrf.mxu1 }
0x26b8   :  { %v1367_v6 = vadd.f32 %v1361_v41, %v836_v20 }
0x26b9   :  { %v2721_v39 = vpop.f32.mrf.mxu1 }
0x26bb   :  { %v1364_v51 = vpop.f32.mrf.mxu1  ;;  %v3452_v54 = vpop.f32.mrf.mxu0 }
0x26bd   :  { %v2722_v63 = vpop.f32.mrf.mxu1  ;;  %v1474_v4 = vpop.f32.mrf.mxu0 }
0x26be   :  { %v1475_v57 = vadd.f32 %v1474_v4, %v3460_v61 }
0x26bf   :  { %v1551_v1 = vpop.f32.mrf.mxu1  ;;  %v3482_v33 = vpop.f32.mrf.mxu0 }
0x26c0   :  { %v1557_v12 = vadd.f32 %v1551_v1, %v1475_v57 }
0x26c1   :  { %v2741_v58 = vpop.f32.mrf.mxu1  ;;  %v1477_v38 = vpop.f32.mrf.mxu0 }
0x26c2   :  { %2949 = vtanh.f32 %v1557_v12  ;;  %v1478_v40 = vadd.f32 %v1477_v38, %v3460_v61  ;;  %v1483_v12 = vadd.f32 %v3452_v54, %v3460_v61 }
0x26c3   :  { %v1554_v9 = vpop.f32.mrf.mxu1 }
0x26c5   :  { %v2742_v13 = vpop.f32.mrf.mxu1 }
0x26cf   :  { %v2950_v14 = vpop.eup %2949 }
0x26d0   :  { %1563 = vrot.lane.b32.xlu1 %v2950_v14, %s3037_s18  ;;  %v1559_v15 = vmul.f32 0.5, %v2950_v14 }
0x26d2   :  { %v1560_v2 = vadd.f32 0.5, %v1559_v15 }
0x26d4   :  { %v1561_v30 = vmul.f32 0.0, %v1560_v2 }
0x2742   :  { %v1564_v10 = vpop.permute.xlu1 %1563 }
0x2743   :  { %v1566_v16 = vmul.f32 %v1564_v10, %v1560_v2 }
0x2745   :  { %1568 = vrot.lane.b32.xlu0 %v1566_v16, %s3043_s5 }
0x27b7   :  { %v1569_v17 = vpop.permute.xlu0 %1568 }
0x27b8   :  { %v1571_v11 = vadd.f32 %v1569_v17, %v1561_v30 }
0x27ba   :  { %2951 = vtanh.f32 %v1571_v11 }
0x27bb   :  { %2953 = vtanh.f32 %v1367_v6 }
0x27c7   :  { %v2952_v5 = vpop.eup %2951 }
0x27c8   :  { %1574 = vrot.lane.b32.xlu1 %v2952_v5, %s3037_s18  ;;  %v2954_v49 = vpop.eup %2953 }
0x27c9   :  { %v1369_v60 = vmul.f32 0.5, %v2954_v49 }
0x27cb   :  { %v1370_v24 = vadd.f32 0.5, %v1369_v60 }
0x27cc   :  { %1373 = vrot.lane.b32.xlu1 %v2954_v49, %s3037_s18 }
0x27cd   :  { %v1371_v28 = vmul.f32 %v1370_v24, %v3409_v56 }
0x283a   :  { %v1575_v18 = vpop.permute.xlu1 %1574 }
0x283b   :  { %v1577_v3 = vmul.f32 %v1575_v18, %v1560_v2 }
0x283d   :  { %v1578_v21 = vpack.c.bf16 %v1577_v3, %v1577_v3 }
0x283e   :  { %v1374_v25 = vpop.permute.xlu1 %1373 }
0x283f   :  { %v1376_v26 = vmul.f32 %v1374_v25, %v1370_v24  ;;  %1580 = vrot.lane.b32.xlu0 %v1578_v21, %s3043_s5 }
0x2841   :  { %1378 = vrot.lane.b32.xlu1 %v1376_v26, %s3043_s5 }
0x28b1   :  { %v1581_v27 = vpop.permute.xlu0 %1580 }
0x28b2   :  { %2748 = vmatmul.mubr.msk.bf16.vlgmr.msra.gmra.mxu1 %vm181_vm2, %v1581_v27 }
0x28b3   :  { %v1379_v29 = vpop.permute.xlu1 %1378  ;;  %2760 = vmatpush3.bf16.msra.mxu1 %v3426_v59  ;;  %2763 = vmatprep.mubr.msk.bf16.mxu1 %vm3041_vm0, %v3040_v0 }
0x28b4   :  { %v1381_v31 = vadd.f32 %v1379_v29, %v1371_v28  ;;  %2761 = vmatprep.subr.bf16.mxu1 %v3040_v0 }
0x28b6   :  { %2955 = vtanh.f32 %v1381_v31 }
0x28b7   :  { %2762 = vmatpush3.bf16.msra.mxu1 %v3430_v53 }
0x28b8   :  { %2775 = vmatprep.subr.bf16.mxu1 %v3040_v0 }
0x28c3   :  { %v2956_v32 = vpop.eup %2955 }
0x28c4   :  { %1384 = vrot.lane.b32.xlu1 %v2956_v32, %s3037_s18 }
0x28c8   :  { %1412 = vrot.lane.b32.xlu1 %v1390_v34, %s3043_s5 }
0x2936   :  { %v1385_v35 = vpop.permute.xlu1 %1384 }
0x2937   :  { %v1387_v50 = vmul.f32 %v1385_v35, %v1370_v24  ;;  %v1486_v24 = vadd.f32 %v3482_v33, %v3460_v61 }
0x2939   :  { %v1391_v41 = vpack.c.bf16 %v1387_v50, %v3417_v44 }
0x293a   :  { %v1413_v37 = vpop.permute.xlu1 %1412 }
0x293b   :  { %2731 = vmatprep.mubr.msk.bf16.mxu0 %vm181_vm2, %v1413_v37 }
0x2972   :  { %v1619_v36 = vpop.f32.mrf.mxu1 }
0x2973   :  { %v1625_v56 = vadd.f32 %v1619_v36, %v1478_v40 }
0x2974   :  { %v2749_v45 = vpop.f32.mrf.mxu1 }
0x2975   :  { %2957 = vtanh.f32 %v1625_v56 }
0x2976   :  { %v1622_v42 = vpop.f32.mrf.mxu1 }
0x2978   :  { %v2750_v43 = vpop.f32.mrf.mxu1 }
0x2982   :  { %v2958_v62 = vpop.eup %2957 }
0x2983   :  { %1631 = vrot.lane.b32.xlu0 %v2958_v62, %s3037_s18  ;;  %v1627_v7 = vmul.f32 0.5, %v2958_v62 }
0x2985   :  { %v1628_v23 = vadd.f32 0.5, %v1627_v7 }
0x2987   :  { %v1629_v47 = vmul.f32 %v1628_v23, %v1571_v11 }
0x29f5   :  { %v1632_v22 = vpop.permute.xlu0 %1631 }
0x29f6   :  { %v1634_v46 = vmul.f32 %v1632_v22, %v1628_v23 }
0x29f8   :  { %1636 = vrot.lane.b32.xlu0 %v1634_v46, %s3043_s5 }
0x2a6a   :  { %v1637_v48 = vpop.permute.xlu0 %1636 }
0x2a6b   :  { %v1639_v52 = vadd.f32 %v1637_v48, %v1629_v47 }
0x2a6d   :  { %2959 = vtanh.f32 %v1639_v52 }
0x2a7a   :  { %v2960_v20 = vpop.eup %2959 }
0x2a7b   :  { %1642 = vrot.lane.b32.xlu0 %v2960_v20, %s3037_s18 }
0x2a7f   :  { %1414 = vrot.lane.b32.xlu0 %v1391_v41, %s3043_s5 }
0x2aed   :  { %v1643_v6 = vpop.permute.xlu0 %1642 }
0x2aee   :  { %v1645_v19 = vmul.f32 %v1643_v6, %v1628_v23 }
0x2af0   :  { %v1646_v39 = vpack.c.bf16 %v1645_v19, %v1645_v19 }
0x2af1   :  { %v1415_v51 = vpop.permute.xlu0 %1414 }
0x2af2   :  { %1648 = vrot.lane.b32.xlu1 %v1646_v39, %s3043_s5  ;;  %2732 = vmatmul.mubr.msk.bf16.gmra.mxu0 %vm181_vm2, %v1415_v51 }
0x2af3   :  { %2755 = vmatprep.mubr.msk.bf16.mxu0 %vm3041_vm0, %v3040_v0 }
0x2b64   :  { %v1649_v63 = vpop.permute.xlu1 %1648 }
0x2b65   :  { %2756 = vmatmul.mubr.msk.bf16.vlgmr.msra.gmra.mxu0 %vm181_vm2, %v1649_v63 }
0x2b66   :  { %2768 = vmatpush3.bf16.msra.mxu0 %v3426_v59  ;;  %2771 = vmatprep.mubr.msk.bf16.mxu0 %vm3041_vm0, %v3040_v0 }
0x2b67   :  { %2769 = vmatprep.subr.bf16.mxu0 %v3040_v0 }
0x2b6a   :  { %2770 = vmatpush3.bf16.msra.mxu0 %v3430_v53 }
0x2b6b   :  { %2783 = vmatprep.subr.bf16.mxu0 %v3040_v0 }
0x2bb2   :  { %v3501_v44 = vpop.f32.mrf.mxu0 }
0x2bb4   :  { %v3503_v4 = vpop.f32.mrf.mxu0 }
0x2bb5   :  { %v1491_v62 = vadd.f32 %v3503_v4, %v3460_v61 }
0x2bb6   :  { %v3505_v57 = vpop.f32.mrf.mxu0 }
0x2bb8   :  { %v3507_v1 = vpop.f32.mrf.mxu0 }
0x2c25   :  { %v1687_v58 = vpop.f32.mrf.mxu0 }
0x2c26   :  { %v1693_v9 = vadd.f32 %v1687_v58, %v1483_v12 }
0x2c27   :  { %v2757_v13 = vpop.f32.mrf.mxu0 }
0x2c28   :  { %2961 = vtanh.f32 %v1693_v9  ;;  %v1494_v9 = vadd.f32 %v3507_v1, %v3460_v61 }
0x2c29   :  { %v1690_v14 = vpop.f32.mrf.mxu0 }
0x2c2b   :  { %v2758_v15 = vpop.f32.mrf.mxu0 }
0x2c35   :  { %v2962_v2 = vpop.eup %2961 }
0x2c36   :  { %1699 = vrot.lane.b32.xlu0 %v2962_v2, %s3037_s18  ;;  %v1695_v10 = vmul.f32 0.5, %v2962_v2 }
0x2c38   :  { %v1696_v16 = vadd.f32 0.5, %v1695_v10 }
0x2c3a   :  { %v1697_v11 = vmul.f32 %v1696_v16, %v1639_v52 }
0x2ca8   :  { %v1700_v30 = vpop.permute.xlu0 %1699 }
0x2ca9   :  { %v1702_v17 = vmul.f32 %v1700_v30, %v1696_v16 }
0x2cab   :  { %1704 = vrot.lane.b32.xlu1 %v1702_v17, %s3043_s5 }
0x2d1d   :  { %v1705_v5 = vpop.permute.xlu1 %1704 }
0x2d1e   :  { %v1707_v49 = vadd.f32 %v1705_v5, %v1697_v11 }
0x2d20   :  { %2963 = vtanh.f32 %v1707_v49 }
0x2d2d   :  { %v2964_v54 = vpop.eup %2963 }
0x2d2e   :  { %1710 = vrot.lane.b32.xlu0 %v2964_v54, %s3037_s18 }
0x2da0   :  { %v1711_v60 = vpop.permute.xlu0 %1710 }
0x2da1   :  { %v1713_v18 = vmul.f32 %v1711_v60, %v1696_v16 }
0x2da3   :  { %v1714_v3 = vpack.c.bf16 %v1713_v18, %v1713_v18 }
0x2da5   :  { %1716 = vrot.lane.b32.xlu1 %v1714_v3, %s3043_s5 }
0x2e17   :  { %v1717_v21 = vpop.permute.xlu1 %1716 }
0x2e18   :  { %2764 = vmatmul.mubr.msk.bf16.vlgmr.msra.gmra.mxu1 %vm181_vm2, %v1717_v21  ;;  %v1499_v21 = vadd.f32 %v3501_v44, %v3460_v61 }
0x2e19   :  { %2776 = vmatpush3.bf16.msra.mxu1 %v3426_v59  ;;  %2779 = vmatprep.mubr.msk.bf16.mxu1 %vm3041_vm0, %v3040_v0 }
0x2e1a   :  { %2777 = vmatprep.subr.bf16.mxu1 %v3040_v0 }
0x2e1d   :  { %2778 = vmatpush3.bf16.msra.mxu1 %v3430_v53 }
0x2e1e   :  { %2791 = vmatprep.subr.bf16.mxu1 %v3040_v0 }
0x2ed8   :  { %v1755_v25 = vpop.f32.mrf.mxu1 }
0x2ed9   :  { %v1761_v26 = vadd.f32 %v1755_v25, %v1486_v24 }
0x2eda   :  { %v2765_v27 = vpop.f32.mrf.mxu1 }
0x2edb   :  { %2965 = vtanh.f32 %v1761_v26 }
0x2edc   :  { %v1758_v28 = vpop.f32.mrf.mxu1 }
0x2ede   :  { %v2766_v29 = vpop.f32.mrf.mxu1 }
0x2ee8   :  { %v2966_v31 = vpop.eup %2965 }
0x2ee9   :  { %1767 = vrot.lane.b32.xlu0 %v2966_v31, %s3037_s18  ;;  %v1763_v32 = vmul.f32 0.5, %v2966_v31 }
0x2eeb   :  { %v1764_v34 = vadd.f32 0.5, %v1763_v32 }
0x2eed   :  { %v1765_v38 = vmul.f32 %v1764_v34, %v1707_v49 }
0x2f5b   :  { %v1768_v35 = vpop.permute.xlu0 %1767 }
0x2f5c   :  { %v1770_v37 = vmul.f32 %v1768_v35, %v1764_v34 }
0x2f5e   :  { %1772 = vrot.lane.b32.xlu1 %v1770_v37, %s3043_s5 }
0x2fd0   :  { %v1773_v40 = vpop.permute.xlu1 %1772 }
0x2fd1   :  { %v1775_v36 = vadd.f32 %v1773_v40, %v1765_v38 }
0x2fd3   :  { %2967 = vtanh.f32 %v1775_v36 }
0x2fe0   :  { %v2968_v33 = vpop.eup %2967 }
0x2fe1   :  { %1778 = vrot.lane.b32.xlu0 %v2968_v33, %s3037_s18 }
0x3053   :  { %v1779_v56 = vpop.permute.xlu0 %1778 }
0x3054   :  { %v1781_v45 = vmul.f32 %v1779_v56, %v1764_v34 }
0x3056   :  { %v1782_v42 = vpack.c.bf16 %v1781_v45, %v1781_v45 }
0x3058   :  { %1784 = vrot.lane.b32.xlu1 %v1782_v42, %s3043_s5  ;;  %v1502_v42 = vadd.f32 %v3505_v57, %v3460_v61 }
0x30ca   :  { %v1785_v43 = vpop.permute.xlu1 %1784 }
0x30cb   :  { %2772 = vmatmul.mubr.msk.bf16.vlgmr.msra.gmra.mxu0 %vm181_vm2, %v1785_v43 }
0x30cc   :  { %2784 = vmatpush3.bf16.msra.mxu0 %v3426_v59  ;;  %2787 = vmatprep.mubr.msk.bf16.mxu0 %vm3041_vm0, %v3040_v0 }
0x30cd   :  { %2785 = vmatprep.subr.bf16.mxu0 %v3040_v0 }
0x30d0   :  { %2786 = vmatpush3.bf16.msra.mxu0 %v3430_v53 }
0x30d1   :  { %2799 = vmatprep.subr.bf16.mxu0 %v3040_v0 }
0x318b   :  { %v1823_v7 = vpop.f32.mrf.mxu0 }
0x318c   :  { %v1829_v23 = vadd.f32 %v1823_v7, %v1491_v62 }
0x318d   :  { %v2773_v22 = vpop.f32.mrf.mxu0 }
0x318e   :  { %2969 = vtanh.f32 %v1829_v23 }
0x318f   :  { %v1826_v46 = vpop.f32.mrf.mxu0 }
0x3191   :  { %v2774_v47 = vpop.f32.mrf.mxu0 }
0x319b   :  { %v2970_v48 = vpop.eup %2969 }
0x319c   :  { %1835 = vrot.lane.b32.xlu0 %v2970_v48, %s3037_s18  ;;  %v1831_v52 = vmul.f32 0.5, %v2970_v48 }
0x319e   :  { %v1832_v50 = vadd.f32 0.5, %v1831_v52 }
0x31a0   :  { %v1833_v6 = vmul.f32 %v1832_v50, %v1775_v36 }
0x320e   :  { %v1836_v20 = vpop.permute.xlu0 %1835 }
0x320f   :  { %v1838_v41 = vmul.f32 %v1836_v20, %v1832_v50 }
0x3211   :  { %1840 = vrot.lane.b32.xlu1 %v1838_v41, %s3043_s5 }
0x3283   :  { %v1841_v19 = vpop.permute.xlu1 %1840 }
0x3284   :  { %v1843_v39 = vadd.f32 %v1841_v19, %v1833_v6 }
0x3286   :  { %2971 = vtanh.f32 %v1843_v39 }
0x3293   :  { %v2972_v51 = vpop.eup %2971 }
0x3294   :  { %1846 = vrot.lane.b32.xlu0 %v2972_v51, %s3037_s18 }
0x3306   :  { %v1847_v63 = vpop.permute.xlu0 %1846 }
0x3307   :  { %v1849_v4 = vmul.f32 %v1847_v63, %v1832_v50  ;;  %v2078_v63 = vsub.s32 3, %v3111_v8 }
0x3309   :  { %v1850_v12 = vpack.c.bf16 %v1849_v4, %v1849_v4  ;;  %v2079_v4 = vrot.slane %v3457_v55, %v2078_v63 }
0x330b   :  { %1852 = vrot.lane.b32.xlu1 %v1850_v12, %s3043_s5 }
0x337d   :  { %v1853_v58 = vpop.permute.xlu1 %1852 }
0x337e   :  { %2780 = vmatmul.mubr.msk.bf16.vlgmr.msra.gmra.mxu1 %vm181_vm2, %v1853_v58 }
0x337f   :  { %2792 = vmatpush3.bf16.msra.mxu1 %v3426_v59  ;;  %2795 = vmatprep.mubr.msk.bf16.mxu1 %vm3041_vm0, %v3040_v0 }
0x3380   :  { %2793 = vmatprep.subr.bf16.mxu1 %v3040_v0 }
0x3383   :  { %2794 = vmatpush3.bf16.msra.mxu1 %v3430_v53 }
0x3384   :  { %2807 = vmatprep.subr.bf16.mxu1 %v3040_v0 }
0x343e   :  { %v1891_v13 = vpop.f32.mrf.mxu1 }
0x343f   :  { %v1897_v14 = vadd.f32 %v1891_v13, %v1494_v9 }
0x3440   :  { %v2781_v15 = vpop.f32.mrf.mxu1 }
0x3441   :  { %2973 = vtanh.f32 %v1897_v14 }
0x3442   :  { %v1894_v2 = vpop.f32.mrf.mxu1 }
0x3443   :  { %v2087_v2 = vsub.s32 4, %v3111_v8 }
0x3444   :  { %v2782_v10 = vpop.f32.mrf.mxu1 }
0x3445   :  { %v2088_v10 = vrot.slane %v3457_v55, %v2087_v2 }
0x344e   :  { %v2974_v16 = vpop.eup %2973 }
0x344f   :  { %1903 = vrot.lane.b32.xlu0 %v2974_v16, %s3037_s18  ;;  %v1899_v59 = vmul.f32 0.5, %v2974_v16  ;;  %v2871_v16 = vld [vmem:[#allocation4 + $0x8] sm:$0xff]  }
0x3451   :  { %v1900_v30 = vadd.f32 0.5, %v1899_v59  ;;  %v2872_v59 = vld [vmem:[#allocation4] sm:$0xff]  }
0x3453   :  { %v1901_v53 = vmul.f32 %v1900_v30, %v1843_v39 }
0x34c1   :  { %v1904_v17 = vpop.permute.xlu0 %1903 }
0x34c2   :  { %v1906_v11 = vmul.f32 %v1904_v17, %v1900_v30 }
0x34c4   :  { %1908 = vrot.lane.b32.xlu1 %v1906_v11, %s3043_s5 }
0x3536   :  { %v1909_v5 = vpop.permute.xlu1 %1908 }
0x3537   :  { %v1911_v49 = vadd.f32 %v1909_v5, %v1901_v53  ;;  %v2873_v53 = vld [vmem:[#allocation4 + $0x48] sm:$0xff]  }
0x3539   :  { %2975 = vtanh.f32 %v1911_v49 }
0x3546   :  { %v2976_v1 = vpop.eup %2975 }
0x3547   :  { %1914 = vrot.lane.b32.xlu0 %v2976_v1, %s3037_s18 }
0x35b9   :  { %v1915_v54 = vpop.permute.xlu0 %1914 }
0x35ba   :  { %v1917_v60 = vmul.f32 %v1915_v54, %v1900_v30 }
0x35bc   :  { %v1918_v18 = vpack.c.bf16 %v1917_v60, %v1917_v60 }
0x35be   :  { %1920 = vrot.lane.b32.xlu1 %v1918_v18, %s3043_s5 }
0x3630   :  { %v1921_v3 = vpop.permute.xlu1 %1920 }
0x3631   :  { %2788 = vmatmul.mubr.msk.bf16.vlgmr.msra.gmra.mxu0 %vm181_vm2, %v1921_v3 }
0x3632   :  { %2803 = vmatprep.mubr.msk.bf16.mxu0 %vm3041_vm0, %v3040_v0  ;;  %2800 = vmatpush3.bf16.msra.mxu0 %v2871_v16 }
0x3633   :  { %2801 = vmatprep.subr.bf16.mxu0 %v3040_v0 }
0x3636   :  { %2802 = vmatpush3.bf16.msra.mxu0 %v2872_v59 }
0x3637   :  { %2827 = vmatprep.subr.bf16.mxu0 %v3040_v0 }
0x36f1   :  { %v1959_v24 = vpop.f32.mrf.mxu0 }
0x36f2   :  { %v1965_v25 = vadd.f32 %v1959_v24, %v1499_v21  ;;  %v2874_v24 = vld [vmem:[#allocation4 + $0x40] sm:$0xff]  }
0x36f3   :  { %v2789_v26 = vpop.f32.mrf.mxu0 }
0x36f4   :  { %2977 = vtanh.f32 %v1965_v25  ;;  %v2875_v25 = vld [vmem:[#allocation4 + $0x38] sm:$0xff]   ;;  %v2876_v26 = vld [vmem:[#allocation4 + $0x30] sm:$0xff]  }
0x36f5   :  { %v1962_v27 = vpop.f32.mrf.mxu0 }
0x36f6   :  { %v2877_v27 = vld [vmem:[#allocation4 + $0x28] sm:$0xff]  }
0x36f7   :  { %v2790_v28 = vpop.f32.mrf.mxu0 }
0x36f8   :  { %v2878_v28 = vld [vmem:[#allocation4 + $0x20] sm:$0xff]  }
0x3701   :  { %v2978_v29 = vpop.eup %2977 }
0x3702   :  { %1971 = vrot.lane.b32.xlu0 %v2978_v29, %s3037_s18  ;;  %v1967_v31 = vmul.f32 0.5, %v2978_v29  ;;  %v2879_v29 = vld [vmem:[#allocation4 + $0x18] sm:$0xff]  }
0x3704   :  { %v1968_v32 = vadd.f32 0.5, %v1967_v31  ;;  %v2880_v31 = vld [vmem:[#allocation4 + $0x10] sm:$0xff]  }
0x3706   :  { %v1969_v37 = vmul.f32 %v1968_v32, %v1911_v49 }
0x3774   :  { %v1972_v34 = vpop.permute.xlu0 %1971 }
0x3775   :  { %v1974_v35 = vmul.f32 %v1972_v34, %v1968_v32  ;;  %v2133_v34 = vsub.s32 5, %v3111_v8 }
0x3777   :  { %1976 = vrot.lane.b32.xlu1 %v1974_v35, %s3043_s5  ;;  %v2134_v35 = vrot.slane %v3457_v55, %v2133_v34 }
0x37e9   :  { %v1977_v38 = vpop.permute.xlu1 %1976 }
0x37ea   :  { %v1979_v40 = vadd.f32 %v1977_v38, %v1969_v37 }
0x37ec   :  { %2979 = vtanh.f32 %v1979_v40 }
0x37f9   :  { %v2980_v44 = vpop.eup %2979 }
0x37fa   :  { %1982 = vrot.lane.b32.xlu0 %v2980_v44, %s3037_s18 }
0x386c   :  { %v1983_v36 = vpop.permute.xlu0 %1982 }
0x386d   :  { %v1985_v33 = vmul.f32 %v1983_v36, %v1968_v32  ;;  %v2881_v32 = vld [vmem:[#allocation4 + $0x88] sm:$0xff]  }
0x386f   :  { %v1986_v56 = vpack.c.bf16 %v1985_v33, %v1985_v33 }
0x3871   :  { %1988 = vrot.lane.b32.xlu1 %v1986_v56, %s3043_s5 }
0x38e3   :  { %v1989_v45 = vpop.permute.xlu1 %1988 }
0x38e4   :  { %2796 = vmatmul.mubr.msk.bf16.vlgmr.msra.gmra.mxu1 %vm181_vm2, %v1989_v45 }
0x38e5   :  { %2823 = vmatprep.mubr.msk.bf16.mxu1 %vm3041_vm0, %v3040_v0  ;;  %2808 = vmatpush3.bf16.msra.mxu1 %v2873_v53 }
0x38e6   :  { %2809 = vmatprep.subr.bf16.mxu1 %v3040_v0 }
0x38e9   :  { %2810 = vmatpush3.bf16.msra.mxu1 %v2874_v24 }
0x38ea   :  { %2811 = vmatprep.subr.bf16.mxu1 %v3040_v0 }
0x38ed   :  { %2812 = vmatpush3.bf16.msra.mxu1 %v2875_v25 }
0x38ee   :  { %2813 = vmatprep.subr.bf16.mxu1 %v3040_v0 }
0x38f1   :  { %2814 = vmatpush3.bf16.msra.mxu1 %v2876_v26 }
0x38f2   :  { %2815 = vmatprep.subr.bf16.mxu1 %v3040_v0 }
0x38f5   :  { %2816 = vmatpush3.bf16.msra.mxu1 %v2877_v27 }
0x38f6   :  { %2817 = vmatprep.subr.bf16.mxu1 %v3040_v0 }
0x38f9   :  { %2818 = vmatpush3.bf16.msra.mxu1 %v2878_v28 }
0x38fa   :  { %2819 = vmatprep.subr.bf16.mxu1 %v3040_v0 }
0x38fd   :  { %2820 = vmatpush3.bf16.msra.mxu1 %v2879_v29 }
0x38fe   :  { %2821 = vmatprep.subr.bf16.mxu1 %v3040_v0 }
0x3901   :  { %2822 = vmatpush3.bf16.msra.mxu1 %v2880_v31 }
0x39a4   :  { %v2027_v43 = vpop.f32.mrf.mxu1 }
0x39a5   :  { %v2033_v62 = vadd.f32 %v2027_v43, %v1502_v42 }
0x39a6   :  { %v2797_v7 = vpop.f32.mrf.mxu1 }
0x39a7   :  { %2981 = vtanh.f32 %v2033_v62  ;;  %v2882_v7 = vld [vmem:[#allocation4 + $0x80] sm:$0xff]  }
0x39a8   :  { %v2030_v23 = vpop.f32.mrf.mxu1 }
0x39a9   :  { %v2883_v23 = vld [vmem:[#allocation4 + $0x78] sm:$0xff]  }
0x39aa   :  { %v2798_v22 = vpop.f32.mrf.mxu1 }
0x39ab   :  { %v2884_v22 = vld [vmem:[#allocation4 + $0x70] sm:$0xff]  }
0x39b4   :  { %v2982_v46 = vpop.eup %2981 }
0x39b5   :  { %2039 = vrot.lane.b32.xlu0 %v2982_v46, %s3037_s18  ;;  %v2035_v47 = vmul.f32 0.5, %v2982_v46  ;;  %v2885_v46 = vld [vmem:[#allocation4 + $0x68] sm:$0xff]  }
0x39b7   :  { %v2036_v48 = vadd.f32 0.5, %v2035_v47  ;;  %v2886_v47 = vld [vmem:[#allocation4 + $0x60] sm:$0xff]  }
0x39b9   :  { %v2037_v20 = vmul.f32 %v2036_v48, %v1979_v40 }
0x3a27   :  { %v2040_v52 = vpop.permute.xlu0 %2039 }
0x3a28   :  { %v2042_v50 = vmul.f32 %v2040_v52, %v2036_v48  ;;  %v2888_v52 = vld [vmem:[#allocation4 + $0x50] sm:$0xff]  }
0x3a2a   :  { %2044 = vrot.lane.b32.xlu1 %v2042_v50, %s3043_s5  ;;  %v2201_v50 = vsub.s32 6, %v3111_v8 }
0x3a9c   :  { %v2045_v41 = vpop.permute.xlu1 %2044 }
0x3a9d   :  { %v2047_v6 = vadd.f32 %v2045_v41, %v2037_v20  ;;  %v2202_v20 = vrot.slane %v3457_v55, %v2201_v50 }
0x3a9f   :  { %2983 = vtanh.f32 %v2047_v6 }
0x3aac   :  { %v2984_v61 = vpop.eup %2983 }
0x3aad   :  { %2050 = vrot.lane.b32.xlu0 %v2984_v61, %s3037_s18 }
0x3b1f   :  { %v2051_v57 = vpop.permute.xlu0 %2050 }
0x3b20   :  { %v2053_v19 = vmul.f32 %v2051_v57, %v2036_v48  ;;  %v2887_v48 = vld [vmem:[#allocation4 + $0x58] sm:$0xff]  }
0x3b22   :  { %2055 = vrot.lane.b32.xlu1 %v2053_v19, %s3043_s5 }
0x3b94   :  { %v2056_v39 = vpop.permute.xlu1 %2055 }
0x3b95   :  { %v2058_v51 = vsel %vm181_vm2, %v2056_v39, 0.0 }
0x3b96   :  { %2059 = vadd.xlane.f32.xlu0 %v2058_v51 }
0x3bac   :  { %2081 = vrot.lane.b32.xlu0 %v2079_v4, %s3044_s3 }
0x3c1f   :  { %v2060_v12 = vpop.xlane.xlu0 %2059 }
0x3c20   :  { %v2062_v58 = vmul.f32 0.03125, %v2060_v12 }
0x3c22   :  { %v2063_v9 = vsub.f32 %v2053_v19, %v2062_v58 }
0x3c23   :  { %v2082_v49 = vpop.permute.xlu0 %2081 }
0x3c24   :  { %v2064_v13 = vmul.f32 %v2063_v9, %v2063_v9 }
0x3c26   :  { %2066 = vrot.lane.b32.xlu1 %v2064_v13, %s3043_s5 }
0x3c98   :  { %v2067_v14 = vpop.permute.xlu1 %2066 }
0x3c99   :  { %v2069_v15 = vsel %vm181_vm2, %v2067_v14, 0.0 }
0x3c9a   :  { %2070 = vadd.xlane.f32.xlu1 %v2069_v15 }
0x3cab   :  { %2090 = vrot.lane.b32.xlu1 %v2088_v10, %s3044_s3 }
0x3d23   :  { %v2071_v30 = vpop.xlane.xlu1 %2070 }
0x3d24   :  { %v2072_v17 = vmul.f32 0.03125, %v2071_v30 }
0x3d26   :  { %v2073_v11 = vadd.f32 1e-05, %v2072_v17 }
0x3d27   :  { %v2091_v54 = vpop.permute.xlu1 %2090 }
0x3d28   :  { %2985 = vrsqrt.f32 %v2073_v11 }
0x3d35   :  { %v2986_v5 = vpop.eup %2985 }
0x3d36   :  { %v2075_v1 = vmul.f32 %v2986_v5, %v2063_v9 }
0x3d38   :  { %v2084_v60 = vmul.f32 %v2082_v49, %v2075_v1 }
0x3d3a   :  { %v2093_v18 = vadd.f32 %v2091_v54, %v2084_v60 }
0x3d3c   :  { %v2130_v3 = vpack.c.bf16 %v2093_v18, %v2093_v18 }
0x3d3e   :  { %2136 = vrot.lane.b32.xlu0 %v2130_v3, %s3043_s5 }
0x3db0   :  { %v2137_v21 = vpop.permute.xlu0 %2136 }
0x3db1   :  { %2804 = vmatmul.mubr.msk.bf16.vlgmr.msra.gmra.mxu0 %vm181_vm2, %v2137_v21 }
0x3db2   :  { %2843 = vmatprep.mubr.msk.bf16.mxu0 %vm3041_vm0, %v3040_v0  ;;  %2828 = vmatpush3.bf16.msra.mxu0 %v2881_v32 }
0x3db3   :  { %2829 = vmatprep.subr.bf16.mxu0 %v3040_v0 }
0x3db6   :  { %2830 = vmatpush3.bf16.msra.mxu0 %v2882_v7 }
0x3db7   :  { %2831 = vmatprep.subr.bf16.mxu0 %v3040_v0 }
0x3dba   :  { %2832 = vmatpush3.bf16.msra.mxu0 %v2883_v23 }
0x3dbb   :  { %2833 = vmatprep.subr.bf16.mxu0 %v3040_v0 }
0x3dbe   :  { %2834 = vmatpush3.bf16.msra.mxu0 %v2884_v22 }
0x3dbf   :  { %2835 = vmatprep.subr.bf16.mxu0 %v3040_v0 }
0x3dc2   :  { %2836 = vmatpush3.bf16.msra.mxu0 %v2885_v46 }
0x3dc3   :  { %2837 = vmatprep.subr.bf16.mxu0 %v3040_v0 }
0x3dc6   :  { %2838 = vmatpush3.bf16.msra.mxu0 %v2886_v47 }
0x3dc7   :  { %2839 = vmatprep.subr.bf16.mxu0 %v3040_v0 }
0x3dca   :  { %2840 = vmatpush3.bf16.msra.mxu0 %v2887_v48 }
0x3dcb   :  { %2841 = vmatprep.subr.bf16.mxu0 %v3040_v0  ;;  %v2299_v0 = vsub.s32 7, %v3111_v8 }
0x3dcd   :  { %v2300_v9 = vrot.slane %v3457_v55, %v2299_v0 }
0x3dce   :  { %2842 = vmatpush3.bf16.msra.mxu0 %v2888_v52 }
0x3e71   :  { %v2187_v37 = vpop.f32.mrf.mxu0 }
0x3e72   :  { %v2188_v38 = vadd.f32 %v2187_v37, %v2134_v35 }
0x3e73   :  { %v2805_v40 = vpop.f32.mrf.mxu0 }
0x3e74   :  { %v2193_v44 = vmul.f32 0.5, %v2188_v38 }
0x3e75   :  { %v2190_v36 = vpop.f32.mrf.mxu0 }
0x3e76   :  { %2987 = vtanh.f32 %v2193_v44 }
0x3e77   :  { %v2806_v33 = vpop.f32.mrf.mxu0 }
0x3e83   :  { %v2988_v56 = vpop.eup %2987 }
0x3e84   :  { %v2195_v45 = vmul.f32 0.5, %v2988_v56 }
0x3e86   :  { %v2196_v42 = vadd.f32 0.5, %v2195_v45 }
0x3e88   :  { %v2197_v43 = vmul.f32 %v2196_v42, %v2188_v38 }
0x3e8a   :  { %v2198_v62 = vpack.c.bf16 %v2197_v43, %v2197_v43 }
0x3e8c   :  { %2824 = vmatmul.mubr.bf16.vlgmr.msra.gmra.mxu1 %v2198_v62 }
0x3f4c   :  { %v2285_v41 = vpop.f32.mrf.mxu1 }
0x3f4d   :  { %v2286_v6 = vadd.f32 %v2285_v41, %v2202_v20 }
0x3f4e   :  { %v2825_v61 = vpop.f32.mrf.mxu1 }
0x3f4f   :  { %v2291_v57 = vmul.f32 0.5, %v2286_v6 }
0x3f50   :  { %v2288_v19 = vpop.f32.mrf.mxu1 }
0x3f51   :  { %2989 = vtanh.f32 %v2291_v57 }
0x3f52   :  { %v2826_v39 = vpop.f32.mrf.mxu1 }
0x3f5e   :  { %v2990_v51 = vpop.eup %2989 }
0x3f5f   :  { %v2293_v63 = vmul.f32 0.5, %v2990_v51 }
0x3f61   :  { %v2294_v4 = vadd.f32 0.5, %v2293_v63 }
0x3f63   :  { %v2295_v12 = vmul.f32 %v2294_v4, %v2286_v6 }
0x3f65   :  { %v2296_v58 = vpack.c.bf16 %v2295_v12, %v2295_v12 }
0x3f67   :  { %2844 = vmatmul.mubr.bf16.vlgmr.msra.gmra.mxu0 %v2296_v58 }
0x4027   :  { %v2383_v13 = vpop.f32.mrf.mxu0 }
0x4028   :  { %v2384_v14 = vadd.f32 %v2383_v13, %v2300_v9 }
0x4029   :  { %v2845_v15 = vpop.f32.mrf.mxu0 }
0x402a   :  { %2389 = vst [vmem:[%s3612_s4] sm:$0xff] %v2384_v14 }
0x402b   :  { %v2386_v2 = vpop.f32.mrf.mxu0 }
0x402d   :  { %v2846_v10 = vpop.f32.mrf.mxu0 }
0x402e   :  { %2394 = vsyncpa [#allocation3], 1 }
0x402f   :  { %2395 = vsyncpa [#allocation5], 1 }

</bundles_post_ra>
